<compile_context>
chip_gen: v7x
topology: tpu7x:2x2x1
jax: 0.10.0
libtpu: 0.0.40
codegen_flags: <defaults>
</compile_context>

<pallas_src>
import functools

import jax
import jax.numpy as jnp
from jax import lax
from jax.experimental import pallas as pl
from jax.experimental.pallas import tpu as pltpu

EPS = 1e-10
BIG_DELTA = 1e10
OUT_LANES = 128   # merged output width: feature in lanes [0:F], depth in lane F


def _render_kernel(density_ref, depth_ref, feat_ref, out_ref, *, white_background):
    density = density_ref[...]                     # (TR, P) f32
    depth = depth_ref[...]                         # (TR, P) f32
    tr, n_pts = density.shape
    n_feat = feat_ref.shape[0]
    out_w = out_ref.shape[-1]

    # deltas: depth[i+1] - depth[i], with a huge delta for the last sample.
    # pltpu.roll needs shift >= 0; shift = P-1 is the same rotation as -1.
    depth_next = pltpu.roll(depth, shift=n_pts - 1, axis=1)      # depth[(i+1) % P]
    col = lax.broadcasted_iota(jnp.int32, (tr, n_pts), 1)
    deltas = jnp.where(col == n_pts - 1, BIG_DELTA, depth_next - depth)

    # _compute_weights: alpha compositing with an exclusive cumulative product.
    #   log(1 - alpha) = -density * deltas  (analytic identity, no log needed)
    #   T_i = exp(sum_{j<i} -density_j * deltas_j) -> one MXU matmul against a
    #   strictly-upper-triangular ones mask built in-kernel from iotas.
    s = -density * deltas                                        # (TR, P)
    alpha = 1.0 - jnp.exp(s)                                     # (TR, P)

    row_m = lax.broadcasted_iota(jnp.int32, (n_pts, n_pts), 0)
    col_m = lax.broadcasted_iota(jnp.int32, (n_pts, n_pts), 1)
    mask = (row_m < col_m).astype(jnp.float32)                   # mask[j,i]=1 iff j<i
    excl_logsum = jnp.dot(s, mask, preferred_element_type=jnp.float32)
    transmittance = jnp.exp(excl_logsum)                         # T_0 = 1
    weights = transmittance * alpha                              # (TR, P)

    # _aggregate: weighted reductions over the sample axis, written as columns
    # of a single lane-padded output block (dense writeback per grid step).
    out_ref[...] = jnp.zeros((tr, out_w), jnp.float32)

    if white_background:
        acc = jnp.sum(weights, axis=-1, keepdims=True)
        white_add = 1.0 - acc
    else:
        white_add = None

    for f in range(n_feat):
        feat_f = feat_ref[f].astype(jnp.float32)                 # (TR, P)
        col_f = jnp.sum(weights * feat_f, axis=-1, keepdims=True)
        if white_add is not None:
            col_f = col_f + white_add
        out_ref[:, f:f + 1] = col_f

    out_ref[:, n_feat:n_feat + 1] = jnp.sum(weights * depth, axis=-1, keepdims=True)


def _pick_tile(rays, max_tile):
    """Largest multiple of 8 that divides `rays` and is <= max_tile."""
    tile = 8
    for cand in range(8, min(max_tile, rays) + 1, 8):
        if rays % cand == 0:
            tile = cand
    return tile


def render_chunk(density, depth_values, feature_cm, *, tile_rays=128,
                 white_background=False, vmem_limit_bytes=48 * 1024 * 1024):
    """density/depth: (R, P) f32; feature_cm: (F, R, P). Returns ((R, F), (R, 1))."""
    R, P = density.shape
    F = feature_cm.shape[0]
    assert R % 8 == 0, "rays per chunk must be a multiple of 8"
    assert F + 1 <= OUT_LANES

    tile = _pick_tile(R, tile_rays)

    density = density.astype(jnp.float32)
    depth_values = depth_values.astype(jnp.float32)
    # feature dominates HBM traffic; feed it as bf16 and upcast in-kernel.
    feature_bf16 = feature_cm.astype(jnp.bfloat16)

    kernel = functools.partial(_render_kernel, white_background=white_background)

    merged = pl.pallas_call(
        kernel,
        out_shape=jax.ShapeDtypeStruct((R, OUT_LANES), jnp.float32),
        grid_spec=pltpu.PrefetchScalarGridSpec(
            num_scalar_prefetch=0,
            grid=(R // tile,),
            in_specs=[
                pl.BlockSpec((tile, P), lambda i: (i, 0)),
                pl.BlockSpec((tile, P), lambda i: (i, 0)),
                pl.BlockSpec((F, tile, P), lambda i: (0, i, 0)),
            ],
            out_specs=pl.BlockSpec((tile, OUT_LANES), lambda i: (i, 0)),
        ),
        compiler_params=pltpu.CompilerParams(
            dimension_semantics=("parallel",),
            vmem_limit_bytes=vmem_limit_bytes,
        ),
    )(density, depth_values, feature_bf16)

    return merged[:, :F], merged[:, F:F + 1]


# ------------------------- plain-JAX glue (not the hot path) -------------------------

class RayBundle:
    def __init__(self, origins, directions, sample_lengths=None):
        self.origins = origins
        self.directions = directions
        self.sample_lengths = sample_lengths

    @property
    def shape(self):
        return (self.origins.shape[0],)

    @property
    def sample_shape(self):
        return self.sample_lengths.shape[:2]

    def __getitem__(self, idx):
        sl = None if self.sample_lengths is None else self.sample_lengths[idx]
        return RayBundle(self.origins[idx], self.directions[idx], sl)


class StratifiedSampler:
    def __init__(self, n_pts, near=0.1, far=5.0):
        self.n_pts, self.near, self.far = n_pts, near, far

    def __call__(self, rb):
        B = rb.origins.shape[0]
        t = jnp.linspace(self.near, self.far, self.n_pts, dtype=jnp.float32)
        sample_lengths = jnp.broadcast_to(t[None, :, None], (B, self.n_pts, 1))
        return RayBundle(rb.origins, rb.directions, sample_lengths)


class SyntheticImplicitFn:
    """Deterministic stand-in for the neural field (external to VolumeRenderer)."""

    def __init__(self, key):
        kd, kf = jax.random.split(key)
        self.w_d = jax.random.normal(kd, (3, 1), jnp.float32) * 0.5
        self.w_f = jax.random.normal(kf, (3, 3), jnp.float32) * 0.5

    def __call__(self, rb):
        pts = rb.origins[:, None, :] + rb.sample_lengths * rb.directions[:, None, :]
        B, P, _ = pts.shape
        flat = pts.reshape(-1, 3)
        density = jax.nn.softplus(flat @ self.w_d)          # (B*P, 1)
        feature = jax.nn.sigmoid(flat @ self.w_f)           # (B*P, 3)
        return {"density": density, "feature": feature}


class VolumeRenderer:
    def __init__(self, cfg):
        self._chunk_size = cfg["chunk_size"]
        self._white_background = cfg.get("white_background", False)
        self._tile_rays = cfg.get("tile_rays", 128)

    def forward(self, sampler, implicit_fn, ray_bundle):
        B = ray_bundle.shape[0]
        feats, depths = [], []
        for chunk_start in range(0, B, self._chunk_size):
            cur = ray_bundle[chunk_start:chunk_start + self._chunk_size]
            cur = sampler(cur)
            n_pts = cur.sample_shape[1]

            out = implicit_fn(cur)
            density = out["density"].reshape(-1, n_pts)            # (R, P)
            feature = out["feature"].reshape(-1, n_pts, 3)         # (R, P, 3)
            depth_values = cur.sample_lengths[..., 0]              # (R, P)

            feature_cm = jnp.transpose(feature, (2, 0, 1))         # (F, R, P)
            feat, depth = render_chunk(
                density, depth_values, feature_cm,
                tile_rays=self._tile_rays,
                white_background=self._white_background)
            feats.append(feat)
            depths.append(depth)

        return {"feature": jnp.concatenate(feats, axis=0),
                "depth": jnp.concatenate(depths, axis=0)}

    __call__ = forward


def _reference_render(density, depth_values, feature):
    """Pure-JAX reference of the standard NeRF compositing (for sanity check)."""
    deltas = jnp.concatenate(
        [depth_values[..., 1:] - depth_values[..., :-1],
         BIG_DELTA * jnp.ones_like(depth_values[..., :1])], axis=-1)
    alpha = 1.0 - jnp.exp(-density * deltas)
    trans = jnp.cumprod(
        jnp.concatenate([jnp.ones_like(alpha[..., :1]), 1.0 - alpha + EPS],
                        axis=-1)[..., :-1], axis=-1)
    weights = trans * alpha
    feat = jnp.sum(weights[..., None] * feature, axis=1)
    depth = jnp.sum(weights * depth_values, axis=-1, keepdims=True)
    return feat, depth


if __name__ == "__main__":
    key = jax.random.PRNGKey(0)
    k_o, k_d, k_net = jax.random.split(key, 3)

    B, n_pts = 256, 128
    cfg = {"chunk_size": 256, "white_background": False, "tile_rays": 128}

    origins = jax.random.normal(k_o, (B, 3), jnp.float32) * 0.1
    directions = jax.random.normal(k_d, (B, 3), jnp.float32)
    directions = directions / jnp.linalg.norm(directions, axis=-1, keepdims=True)
    ray_bundle = RayBundle(origins, directions)

    sampler = StratifiedSampler(n_pts)
    implicit_fn = SyntheticImplicitFn(k_net)
    renderer = VolumeRenderer(cfg)

    out = renderer(sampler, implicit_fn, ray_bundle)
    jax.block_until_ready(out["feature"])
    jax.block_until_ready(out["depth"])
    assert out["feature"].shape == (B, 3)
    assert out["depth"].shape == (B, 1)

    # sanity-check against a pure-JAX reference on the full batch
    full = sampler(ray_bundle)
    imp = implicit_fn(full)
    density = imp["density"].reshape(B, n_pts)
    depth_values = full.sample_lengths[..., 0]
    feature = imp["feature"].reshape(B, n_pts, 3)

    # (1) tight: reference fed the same bf16-quantized features the kernel sees
    feat_q = feature.astype(jnp.bfloat16).astype(jnp.float32)
    ref_feat_q, ref_depth = _reference_render(density, depth_values, feat_q)
    assert jnp.allclose(out["feature"], ref_feat_q, atol=2e-4, rtol=1e-3)
    assert jnp.allclose(out["depth"], ref_depth, atol=1e-3, rtol=1e-3)

    # (2) loose: full-f32 reference (bounds the bf16 feature quantization error)
    ref_feat, _ = _reference_render(density, depth_values, feature)
    assert jnp.allclose(out["feature"], ref_feat, atol=1e-2, rtol=1e-2)

    print("KERNEL_OK")
</pallas_src>

<mosaic_0001>
module attributes {stable_mosaic.version = 11 : i64} {
  func.func @_render_kernel(%arg0: i32, %arg1: memref<128x128xf32, #tpu.memory_space<vmem>>, %arg2: memref<128x128xf32, #tpu.memory_space<vmem>>, %arg3: memref<3x128x128xbf16, #tpu.memory_space<vmem>>, %arg4: memref<128x128xf32, #tpu.memory_space<vmem>>) attributes {dimension_semantics = [#tpu.dimension_semantics<parallel>], iteration_bounds = array<i64: 2>, scalar_prefetch = 0 : i64, scratch_operands = 0 : i64, tpu.core_type = #tpu.core_type<tc>, window_params = [{transform_indices = @transform_0, window_bounds = array<i64: 128, 128>}, {transform_indices = @transform_1, window_bounds = array<i64: 128, 128>}, {transform_indices = @transform_2, window_bounds = array<i64: 3, 128, 128>}, {transform_indices = @transform_3, window_bounds = array<i64: 128, 128>}]} {
    %c0 = arith.constant 0 : index
    %c0_0 = arith.constant 0 : index
    %0 = vector.load %arg1[%c0, %c0_0] : memref<128x128xf32, #tpu.memory_space<vmem>>, vector<128x128xf32>
    %c0_1 = arith.constant 0 : index
    %c0_2 = arith.constant 0 : index
    %1 = vector.load %arg2[%c0_1, %c0_2] : memref<128x128xf32, #tpu.memory_space<vmem>>, vector<128x128xf32>
    %c127_i32 = arith.constant 127 : i32
    %2 = tpu.dynamic_rotate %1 by %c127_i32 dim 1 : vector<128x128xf32>, i32 -> vector<128x128xf32>
    %3 = tpu.iota {dimensions = array<i32: 1>} : vector<128x128xi32>
    %c127_i32_3 = arith.constant 127 : i32
    %4 = vector.broadcast %c127_i32_3 : i32 to vector<128x128xi32>
    %5 = arith.cmpi eq, %3, %4 : vector<128x128xi32>
    %6 = arith.subf %2, %1 : vector<128x128xf32>
    %cst = arith.constant 1.000000e+10 : f32
    %7 = vector.broadcast %cst : f32 to vector<128x128xf32>
    %8 = arith.select %5, %7, %6 : vector<128x128xi1>, vector<128x128xf32>
    %cst_4 = arith.constant 0.000000e+00 : f32
    %9 = vector.broadcast %cst_4 : f32 to vector<128x128xf32>
    %10 = arith.subf %9, %0 : vector<128x128xf32>
    %11 = arith.mulf %10, %8 : vector<128x128xf32>
    %12 = math.exp %11 : vector<128x128xf32>
    %cst_5 = arith.constant 1.000000e+00 : f32
    %13 = vector.broadcast %cst_5 : f32 to vector<128x128xf32>
    %14 = arith.subf %13, %12 : vector<128x128xf32>
    %15 = tpu.iota {dimensions = array<i32: 0>} : vector<128x128xi32>
    %16 = tpu.iota {dimensions = array<i32: 1>} : vector<128x128xi32>
    %17 = arith.cmpi slt, %15, %16 : vector<128x128xi32>
    %18 = arith.extui %17 : vector<128x128xi1> to vector<128x128xi32>
    %19 = arith.sitofp %18 : vector<128x128xi32> to vector<128x128xf32>
    %cst_6 = arith.constant dense<0.000000e+00> : vector<128x128xf32>
    %20 = tpu.matmul %11, %19, %cst_6 {dimension_numbers = #tpu.dot_dimension_numbers<[1], [0], [0], [1], [0, 0, 1, 1], [], []>} : vector<128x128xf32>, vector<128x128xf32>, vector<128x128xf32> -> vector<128x128xf32>
    %21 = math.exp %20 : vector<128x128xf32>
    %22 = arith.mulf %21, %14 : vector<128x128xf32>
    %cst_7 = arith.constant 0.000000e+00 : f32
    %23 = vector.broadcast %cst_7 : f32 to vector<128x128xf32>
    %c0_8 = arith.constant 0 : index
    %c0_9 = arith.constant 0 : index
    %24 = vector.load %arg4[%c0_8, %c0_9] : memref<128x128xf32, #tpu.memory_space<vmem>>, vector<128x128xf32>
    tpu.vector_store %arg4[%c0_8, %c0_9], %23 {strides = array<i32>} : memref<128x128xf32, #tpu.memory_space<vmem>>, vector<128x128xf32>,
    %c0_10 = arith.constant 0 : index
    %c0_11 = arith.constant 0 : index
    %c0_12 = arith.constant 0 : index
    %25 = vector.load %arg3[%c0_10, %c0_11, %c0_12] : memref<3x128x128xbf16, #tpu.memory_space<vmem>>, vector<1x128x128xbf16>
    %26 = vector.shape_cast %25 : vector<1x128x128xbf16> to vector<128x128xbf16>
    %27 = arith.extf %26 : vector<128x128xbf16> to vector<128x128xf32>
    %28 = arith.mulf %22, %27 : vector<128x128xf32>
    %cst_13 = arith.constant dense<0.000000e+00> : vector<128xf32>
    %29 = vector.multi_reduction <add>, %28, %cst_13 [1] : vector<128x128xf32> to vector<128xf32>
    %30 = vector.shape_cast %29 : vector<128xf32> to vector<128x1xf32>
    %c0_14 = arith.constant 0 : index
    %c0_15 = arith.constant 0 : index
    %31 = vector.load %arg4[%c0_14, %c0_15] : memref<128x128xf32, #tpu.memory_space<vmem>>, vector<128x1xf32>
    tpu.vector_store %arg4[%c0_14, %c0_15], %30 {strides = array<i32>} : memref<128x128xf32, #tpu.memory_space<vmem>>, vector<128x1xf32>,
    %c1 = arith.constant 1 : index
    %c0_16 = arith.constant 0 : index
    %c0_17 = arith.constant 0 : index
    %32 = vector.load %arg3[%c1, %c0_16, %c0_17] : memref<3x128x128xbf16, #tpu.memory_space<vmem>>, vector<1x128x128xbf16>
    %33 = vector.shape_cast %32 : vector<1x128x128xbf16> to vector<128x128xbf16>
    %34 = arith.extf %33 : vector<128x128xbf16> to vector<128x128xf32>
    %35 = arith.mulf %22, %34 : vector<128x128xf32>
    %cst_18 = arith.constant dense<0.000000e+00> : vector<128xf32>
    %36 = vector.multi_reduction <add>, %35, %cst_18 [1] : vector<128x128xf32> to vector<128xf32>
    %37 = vector.shape_cast %36 : vector<128xf32> to vector<128x1xf32>
    %c0_19 = arith.constant 0 : index
    %c1_20 = arith.constant 1 : index
    %38 = vector.load %arg4[%c0_19, %c1_20] : memref<128x128xf32, #tpu.memory_space<vmem>>, vector<128x1xf32>
    tpu.vector_store %arg4[%c0_19, %c1_20], %37 {strides = array<i32>} : memref<128x128xf32, #tpu.memory_space<vmem>>, vector<128x1xf32>,
    %c2 = arith.constant 2 : index
    %c0_21 = arith.constant 0 : index
    %c0_22 = arith.constant 0 : index
    %39 = vector.load %arg3[%c2, %c0_21, %c0_22] : memref<3x128x128xbf16, #tpu.memory_space<vmem>>, vector<1x128x128xbf16>
    %40 = vector.shape_cast %39 : vector<1x128x128xbf16> to vector<128x128xbf16>
    %41 = arith.extf %40 : vector<128x128xbf16> to vector<128x128xf32>
    %42 = arith.mulf %22, %41 : vector<128x128xf32>
    %cst_23 = arith.constant dense<0.000000e+00> : vector<128xf32>
    %43 = vector.multi_reduction <add>, %42, %cst_23 [1] : vector<128x128xf32> to vector<128xf32>
    %44 = vector.shape_cast %43 : vector<128xf32> to vector<128x1xf32>
    %c0_24 = arith.constant 0 : index
    %c2_25 = arith.constant 2 : index
    %45 = vector.load %arg4[%c0_24, %c2_25] : memref<128x128xf32, #tpu.memory_space<vmem>>, vector<128x1xf32>
    tpu.vector_store %arg4[%c0_24, %c2_25], %44 {strides = array<i32>} : memref<128x128xf32, #tpu.memory_space<vmem>>, vector<128x1xf32>,
    %46 = arith.mulf %22, %1 : vector<128x128xf32>
    %cst_26 = arith.constant dense<0.000000e+00> : vector<128xf32>
    %47 = vector.multi_reduction <add>, %46, %cst_26 [1] : vector<128x128xf32> to vector<128xf32>
    %48 = vector.shape_cast %47 : vector<128xf32> to vector<128x1xf32>
    %c0_27 = arith.constant 0 : index
    %c3 = arith.constant 3 : index
    %49 = vector.load %arg4[%c0_27, %c3] : memref<128x128xf32, #tpu.memory_space<vmem>>, vector<128x1xf32>
    tpu.vector_store %arg4[%c0_27, %c3], %48 {strides = array<i32>} : memref<128x128xf32, #tpu.memory_space<vmem>>, vector<128x1xf32>,
    return
  }
  func.func @transform_0(%arg0: i32) -> (i32, i32) {
    %c0_i32 = arith.constant 0 : i32
    %c0_i32_0 = arith.constant 0 : i32
    return %arg0, %c0_i32 : i32, i32
  }
  func.func @transform_1(%arg0: i32) -> (i32, i32) {
    %c0_i32 = arith.constant 0 : i32
    %c0_i32_0 = arith.constant 0 : i32
    return %arg0, %c0_i32 : i32, i32
  }
  func.func @transform_2(%arg0: i32) -> (i32, i32, i32) {
    %c0_i32 = arith.constant 0 : i32
    %c0_i32_0 = arith.constant 0 : i32
    %c0_i32_1 = arith.constant 0 : i32
    return %c0_i32, %arg0, %c0_i32_0 : i32, i32, i32
  }
  func.func @transform_3(%arg0: i32) -> (i32, i32) {
    %c0_i32 = arith.constant 0 : i32
    %c0_i32_0 = arith.constant 0 : i32
    return %arg0, %c0_i32 : i32, i32
  }
}

</mosaic_0001>

<bundles_post_ra>
// kernel: tpu_custom_call.1
= control target key start
LH: loop header
LB: loop body
LE: loop exit
PB: predicated region body
PF: predicated region fallthrough
CT: control target
= control target key end

     0   :  { %8 = vsyncpa [#allocation3], 0  ;;  %s2841_s0 = inlined_call_operand.hbm [shape: f32[256,128], index: 0, kind: input, shape index: {}]   ;;  %s2842_s1 = inlined_call_operand.hbm [shape: f32[256,128], index: 1, kind: input, shape index: {}]   ;;  %s2843_s2 = inlined_call_operand.hbm [shape: bf16[3,256,128], index: 2, kind: input, shape index: {}]   ;;  %s2844_s3 = inlined_call_operand.hbm [shape: f32[256,128], index: 3, kind: output, shape index: {}]  }
   0x1   :  { %10 = vsyncpa [#allocation3 + $0x1], 0 }
   0x2   :  { %11 = vsyncpa [#allocation6], 0 }
   0x3   :  { %13 = vsyncpa [#allocation6 + $0x1], 0 }
   0x4   :  { %14 = vsyncpa [#allocation4], 0 }
   0x5   :  { %16 = vsyncpa [#allocation4 + $0x1], 0  ;;  %s1876_s12 = smov 0   ;;  %s1878_s13 = smov 0  }
   0x6   :  { %s1880_s14 = smov 0   ;;  %s1882_s15 = smov 0  }
   0x7 LB: > { %s1897_s16 = sadd.s32 4294967295, %s1838_s15   ;;  %s1236_s17 = sadd.s32 4294967294, %s1838_s15   ;;  %s1838_s15 = sphi %s1882_s15, %s2888_s15   ;;  %s1834_s14 = sphi %s1880_s14, %s2887_s14   ;;  %s1830_s13 = sphi %s1878_s13, %s2886_s13   ;;  %s1826_s12 = sphi %s1876_s12, %s2885_s12  }
   0x8   : > { %s1901_s18 = sadd.s32 1, %s1838_s15   ;;  %s29_s19 = sadd.s32 1, %s1834_s14 }
   0x9   : > { %s26_s20 = ssub.s32 %s1838_s15, %s1901_s18  ;;  %p36_p0 = scmp.ne.s32.totalorder %s1834_s14, %s1830_s13 }
   0xa   : > { %p27_p1 = scmp.eq.s32.totalorder %s26_s20, 0  ;;  %p37_p2 = scmp.eq.s32.totalorder %s1838_s15, 0 }
   0xb   : > { %p42_p3 = scmp.ne.s32.totalorder %s1830_s13, %s1826_s12  ;;  %p43_p4 = scmp.eq.s32.totalorder %s1897_s16, 0 }
   0xc   : > { %s1913_s21 = scalar_select %p27_p1, %s1834_s14, %s29_s19  }
   0xd   : > { %p1915_p5 = por %p37_p2, %p36_p0  ;;  %p1919_p6 = por %p43_p4, %p42_p3 }
   0xe   : > { %p118_p7 = scmp.eq.s32.totalorder %s1897_s16, 1  ;;  %p124_p8 = scmp.eq.s32.totalorder %s1236_s17, 1 }
   0xf   : > { %p2845_p11 = scmp.ge.s32.totalorder %s1838_s15, 2 }
  0x10   : > { %p1924_p9 = por %p118_p7, %p36_p0  ;;  %p1928_p10 = por %p124_p8, %p42_p3 }
  0x11   : > { %140 = sbr.rel (%p2845_p11) target bundleno = 84 (0x54), region = 16  ;;  %s1936_s26 = sand.u32 (!%p2845_p11), 1, %s1834_s14  }
  0x12   : > { %s2855_s24 = scalar_select %p1924_p9, 1, 0 }
  0x13   : > { %s2856_s25 = scalar_select %p1928_p10, 1, 0 }
  0x14   : > { %s1322_s27 = sshll.u32 (!%p2845_p11), %s1838_s15, 11  ;;  %s1239_s28 = sshll.u32 (!%p2845_p11), %s1936_s26, 7 }
  0x15   : > { %s1945_s4 = scalar_lea.hbm (!%p2845_p11), %s2841_s0, %s1322_s27  ;;  %s148_s5 = scalar_lea.vmem (!%p2845_p11), [#allocation2], %s1239_s28 }
  0x16   : > { %s155_s6 = sshll.u32 (!%p2845_p11), %s148_s5, 4  ;;  %s145_s7 = scalar_lea.sflag (!%p2845_p11), [#allocation3], %s1936_s26  ;;  %s1949_s6 = int_to_ptr.vmem [resolvable:$true] %s155_s6 }
  0x17   : > { %s1712_s8 = scalar_lea.hbm (!%p2845_p11), %s1945_s4, 2048  ;;  %s1716_s11 = scalar_lea.hbm (!%p2845_p11), %s2841_s0, 4096 }
  0x18   : > { %p1713_p12 = scmp.ne.s32.totalorder %s1945_s4, %s1712_s8  ;;  %p1717_p1 = scmp.lt.u32.totalorder %s1945_s4, %s2841_s0 }
  0x19   : > { %p1718_p2 = scmp.lt.u32.totalorder %s1716_s11, %s1712_s8  ;;  %p1720_p4 = scmp.lt.u32.totalorder %s1712_s8, %s1945_s4 }
  0x1a   : > { %p1714_p13 = pnand %p1713_p12, %p1915_p5 }
  0x1b   : > { %p1719_p3 = por %p1718_p2, %p1717_p1 }
  0x1c   : > { %p1715_p0 = pneg %p1714_p13 }
  0x1d   : > { %p1721_p7 = por %p1720_p4, %p1719_p3 }
  0x1f   : > { %p1722_p8 = pnand %p1721_p7, %p1715_p0 }
  0x21   : > { %1725 = shalt.err (!%p1722_p8)
}
  0x22   : > { %s1726_s20 = scalar_lea.vmem %s1949_s6, 2048  ;;  %s1840_s29 = smov [#allocation2]  }
  0x23   : > { %p1727_p12 = scmp.ne.s32.totalorder %s1949_s6, %s1726_s20  ;;  %s1730_s30 = sshll.u32 %s1840_s29, 4  ;;  %s1731_s30 = int_to_ptr.vmem [resolvable:$false] %s1730_s30 }
  0x24   : > { %s1732_s5 = scalar_lea.vmem %s1731_s30, 4096  ;;  %p1733_p10 = scmp.lt.s32.totalorder %s1949_s6, %s1731_s30 }
  0x25   : > { %p1728_p13 = pnand %p1727_p12, %p1915_p5  ;;  %p1734_p9 = scmp.lt.s32.totalorder %s1732_s5, %s1726_s20 }
  0x27   : > { %p1729_p11 = pneg %p1728_p13  ;;  %p1735_p1 = por %p1734_p9, %p1733_p10 }
  0x29   : > { %p1736_p2 = pnand %p1735_p1, %p1729_p11 }
  0x2b   : > { %1739 = shalt.err (!%p1736_p2)
}
  0x2c   : > { %s1841_s8 = smov 128   ;;  %s1842_s9 = smov 8  }
  0x2d   : > { %1583 = dma.hbm_to_vmem [thread:$0]  (%p1915_p5), %s1945_s4, 2048, %s1949_s6, %s145_s7, %s1841_s8, %s1841_s8, %s1842_s9  }
  0x2e   : > { %s165_s10 = sand.u32 1, %s1838_s15   ;;  %s1984_s19 = scalar_lea.hbm %s2842_s1, %s1322_s27 }
  0x2f   : > { %s169_s20 = scalar_lea.vmem [#allocation5], %s1239_s28  ;;  %s1990_s30 = scalar_lea.sflag [#allocation6], %s165_s10 }
  0x30   : > { %s176_s29 = sshll.u32 %s169_s20, 4  ;;  %s1740_s5 = scalar_lea.hbm %s1984_s19, 2048  ;;  %s1988_s29 = int_to_ptr.vmem [resolvable:$true] %s176_s29 }
  0x31   : > { %p1741_p9 = scmp.ne.s32.totalorder %s1984_s19, %s1740_s5  ;;  %s1744_s27 = scalar_lea.hbm %s2842_s1, 4096 }
  0x32   : > { %p1745_p0 = scmp.lt.u32.totalorder %s1984_s19, %s2842_s1  ;;  %p1746_p3 = scmp.lt.u32.totalorder %s1744_s27, %s1740_s5 }
  0x33   : > { %p1742_p10 = pnand %p1741_p9, %p1915_p5  ;;  %p1748_p7 = scmp.lt.u32.totalorder %s1740_s5, %s1984_s19 }
  0x34   : > { %p1747_p4 = por %p1746_p3, %p1745_p0 }
  0x35   : > { %p1743_p11 = pneg %p1742_p10 }
  0x36   : > { %p1749_p8 = por %p1748_p7, %p1747_p4 }
  0x38   : > { %p1750_p12 = pnand %p1749_p8, %p1743_p11 }
  0x3a   : > { %1753 = shalt.err (!%p1750_p12)
}
  0x3b   : > { %s1754_s28 = scalar_lea.vmem %s1988_s29, 2048  ;;  %s1843_s10 = smov [#allocation5]  }
  0x3c   : > { %p1755_p13 = scmp.ne.s32.totalorder %s1988_s29, %s1754_s28  ;;  %s1758_s17 = sshll.u32 %s1843_s10, 4  ;;  %s1759_s17 = int_to_ptr.vmem [resolvable:$false] %s1758_s17 }
  0x3d   : > { %s1760_s20 = scalar_lea.vmem %s1759_s17, 4096  ;;  %p1761_p9 = scmp.lt.s32.totalorder %s1988_s29, %s1759_s17 }
  0x3e   : > { %p1756_p1 = pnand %p1755_p13, %p1915_p5  ;;  %p1762_p10 = scmp.lt.s32.totalorder %s1760_s20, %s1754_s28 }
  0x40   : > { %p1757_p2 = pneg %p1756_p1  ;;  %p1763_p0 = por %p1762_p10, %p1761_p9 }
  0x42   : > { %p1764_p3 = pnand %p1763_p0, %p1757_p2 }
  0x44   : > { %1767 = shalt.err (!%p1764_p3)
}
  0x45   : > { %1584 = dma.hbm_to_vmem [thread:$0]  (%p1915_p5), %s1984_s19, 2048, %s1988_s29, %s1990_s30, %s1841_s8, %s1841_s8, %s1842_s9  }
  0x46   : > { %s1581_s5 = smul.u32 192, %s1936_s26  ;;  %s1324_s4 = sshll.u32 %s1838_s15, 10 }
  0x47   : > { %s1844_s6 = smov 2048   ;;  %s196_s8 = scalar_lea.hbm %s2843_s2, %s1324_s4 }
  0x48   : > { %1586 = sst [smem:[#allocation10]] (%p1915_p5), %s1844_s6  ;;  %s190_s19 = scalar_lea.vmem [#allocation7], %s1581_s5 }
  0x49   : > { %s1585_s27 = scalar_select %p1915_p5, [#allocation0], [#allocation11] }
  0x4a   : > { %s209_s29 = sshll.u32 %s190_s19, 4  ;;  %s1845_s28 = smov 1024   ;;  %s210_s29 = int_to_ptr.vmem [resolvable:$true] %s209_s29 }
  0x4b   : > { %s201_s9 = sld [smem:[%s1585_s27]]   ;;  %s1846_s26 = smov 16  }
  0x4c   : > { %1587 = sst [smem:[#allocation10 + $0x1]] (%p1915_p5), %s1845_s28  ;;  %s1847_s10 = smov 64  }
  0x4d   : > { %1588 = sst [smem:[#allocation10 + $0x2]] (%p1915_p5), %s1846_s26  ;;  %s1848_s17 = smov 4  }
  0x4e   : > { %1589 = sst [smem:[#allocation10 + $0x3]] (%p1915_p5), %s1847_s10  ;;  %s1849_s6 = smov [#allocation9]  }
  0x4f   : > { %1590 = sst [smem:[#allocation10 + $0x4]] (%p1915_p5), %s1847_s10 }
  0x50   : > { %1591 = sst [smem:[#allocation10 + $0x5]] (%p1915_p5), %s1848_s17 }
  0x51   : > { %s1247_s20 = sshll.u32 %s201_s9, 26 }
  0x52   : > { %s1248_s4 = sadd.s32 134217728, %s1247_s20 }
  0x53   : > { %1592 = dma.general (%p1915_p5), %s196_s8, 3072, %s210_s29, %s1990_s30, %s1849_s6, [#allocation10], %s1248_s4, 0  }
  0x54 PF: > { %p1249_p11 = scmp.ge.s32.totalorder %s1838_s15, 1  ;;  %p230_p4 = scmp.lt.s32.totalorder %s1838_s15, 3 }
  0x56   : > { %p231_p7 = pnand %p1249_p11, %p230_p4 }
  0x58   : > { %234 = sbr.rel (%p231_p7) target bundleno = 745 (0x2e9), region = 32 }
  0x5f   : > { %s2042_s5 = sand.u32 1, %s1830_s13  }
  0x60   : > { %s2045_s27 = sshll.u32 %s2042_s5, 7  ;;  %s237_s7 = scalar_lea.sflag [#allocation3], %s2042_s5 }
  0x61   : > { %s2049_s11 = scalar_lea.vmem [#allocation2], %s2045_s27 }
  0x62   : > { %1813 = dma.done.wait (%p1919_p6), %s237_s7, 2048  }
  0x63   : > { %1815 = vsyncadd (%p1919_p6), %s237_s7, 4294965248  ;;  %s245_s22 = sand.u32 1, %s1897_s16   ;;  %s2057_s8 = scalar_lea.vmem [#allocation5], %s2045_s27 }
  0x64   : > { %s246_s30 = scalar_lea.sflag [#allocation6], %s245_s22 }
  0x65   : > { %1817 = dma.done.wait (%p1919_p6), %s246_s30, 5120  }
  0x66   : > { %1819 = vsyncadd (%p1919_p6), %s246_s30, 4294962176  ;;  %v359_v0 = vlaneseq  ;;  %v2076_v8 = vld [vmem:[%s2057_s8 + $0x8] sm:$0xff]  ;;  %v2079_v9 = vld [vmem:[%s2057_s8] sm:$0xff]  ;;  %s1850_s23 = smov 127   ;;  %v1851_v12 = vmov 1.0|1.0  }
  0x67   : > { %329 = vrot.lane.b32.xlu1 %v2076_v8, %s1850_s23  ;;  %327 = vrot.lane.b32.xlu0 %v2079_v9, %s1850_s23  ;;  %v2086_v10 = vld [vmem:[%s2057_s8 + $0x48] sm:$0xff]  ;;  %v2089_v11 = vld [vmem:[%s2057_s8 + $0x40] sm:$0xff]  ;;  %s1582_s9 = smul.u32 192, %s2042_s5  ;;  %s2417_s29 = scalar_lea.vmem [#allocation8], %s2045_s27 }
  0x68   : > { %v2063_v1 = vand.u32 127, %v359_v0  ;;  %v2065_v2 = vshrl.u32 %v359_v0, 7  ;;  %v2106_v15 = vld [vmem:[%s2057_s8 + $0x50] sm:$0xff]  ;;  %v2138_v21 = vld [vmem:[%s2057_s8 + $0x58] sm:$0xff]  ;;  %v2168_v26 = vld [vmem:[%s2057_s8 + $0x60] sm:$0xff]  ;;  %s1325_s28 = sshll.u32 %s1897_s16, 11 }
  0x69   : > { %v2109_v16 = vld [vmem:[%s2057_s8 + $0x10] sm:$0xff]  ;;  %v2141_v22 = vld [vmem:[%s2057_s8 + $0x18] sm:$0xff]  ;;  %v2171_v27 = vld [vmem:[%s2057_s8 + $0x20] sm:$0xff]  ;;  %s2361_s19 = scalar_lea.vmem [#allocation7], %s1582_s9  ;;  %s1120_s26 = sshll.u32 %s2417_s29, 4  ;;  %s2795_s26 = int_to_ptr.vmem [resolvable:$true] %s1120_s26 }
  0x6a   : > { %v476_v3 = vadd.s32 8, %v2065_v2  ;;  %vm491_vm0 = vcmp.lt.s32.totalorder %v2065_v2, %v2063_v1  ;;  %v477_v4 = vadd.s32 16, %v2065_v2  ;;  %v478_v5 = vadd.s32 24, %v2065_v2  ;;  %v2198_v31 = vld [vmem:[%s2057_s8 + $0x68] sm:$0xff]  ;;  %v2224_v35 = vld [vmem:[%s2057_s8 + $0x70] sm:$0xff]  ;;  %v2244_v37 = vld [vmem:[%s2057_s8 + $0x78] sm:$0xff]  ;;  %s2793_s20 = scalar_lea.hbm %s2844_s3, %s1325_s28 }
  0x6b   : > { %v479_v6 = vadd.s32 32, %v2065_v2  ;;  %v480_v7 = vadd.s32 40, %v2065_v2  ;;  %v481_v13 = vadd.s32 48, %v2065_v2  ;;  %v482_v14 = vadd.s32 56, %v2065_v2  ;;  %345 = vrot.lane.b32.xlu1 %v2086_v10, %s1850_s23  ;;  %343 = vrot.lane.b32.xlu0 %v2089_v11, %s1850_s23  ;;  %2865 = vst [vmem:[#allocation15_spill] sm:$0xff] %v2198_v31  ;;  %v2201_v32 = vld [vmem:[%s2057_s8 + $0x28] sm:$0xff] }
  0x6c   : > { %vm492_vm1 = vcmp.lt.s32.totalorder %v476_v3, %v2063_v1  ;;  %vm493_vm3 = vcmp.lt.s32.totalorder %v477_v4, %v2063_v1  ;;  %vm494_vm4 = vcmp.lt.s32.totalorder %v478_v5, %v2063_v1  ;;  %v483_v18 = vadd.s32 64, %v2065_v2  ;;  %2866 = vst [vmem:[#allocation16_spill] sm:$0xff] %v2224_v35  ;;  %v2227_v36 = vld [vmem:[%s2057_s8 + $0x30] sm:$0xff]  ;;  %2868 = vst [vmem:[#allocation18_spill] sm:$0xff] %v2244_v37  ;;  %v2247_v38 = vld [vmem:[%s2057_s8 + $0x38] sm:$0xff]  ;;  %s1107_s4 = scalar_lea.sflag [#allocation4], %s2042_s5 }
  0x6d   : > { %vm1533_vm2 = vmpackc.low %vm492_vm1, %vm491_vm0  ;;  %vm495_vm5 = vcmp.lt.s32.totalorder %v479_v6, %v2063_v1  ;;  %vm496_vm6 = vcmp.lt.s32.totalorder %v480_v7, %v2063_v1  ;;  %vm497_vm9 = vcmp.lt.s32.totalorder %v481_v13, %v2063_v1  ;;  %vm498_vm10 = vcmp.lt.s32.totalorder %v482_v14, %v2063_v1  ;;  %2867 = vst [vmem:[#allocation17_spill] sm:$0xff] %v2227_v36  ;;  %v296_v39 = vld [vmem:[%s2049_s11 + $0x8] sm:$0xff]  ;;  %v295_v40 = vld [vmem:[%s2049_s11] sm:$0xff]  ;;  %s1768_s6 = scalar_lea.vmem %s2795_s26, 2048  ;;  %p2882_p6 = scmp.ne.s32.totalorder %s2855_s24, 0 }
  0x6e   : > { %1534 = vmatprep.subr.msk.bf16.mxu0 %vm1533_vm2, %v1851_v12  ;;  %1565 = vmatprep.subr.msk.bf16.mxu1 %vm1533_vm2, %v1851_v12  ;;  %vm1537_vm7 = vmpackc.low %vm494_vm4, %vm493_vm3  ;;  %v484_v19 = vadd.s32 72, %v2065_v2  ;;  %vm499_vm12 = vcmp.lt.s32.totalorder %v483_v18, %v2063_v1  ;;  %v485_v23 = vadd.s32 80, %v2065_v2  ;;  %v486_v24 = vadd.s32 88, %v2065_v2  ;;  %2869 = vst [vmem:[#allocation19_spill] sm:$0xff] %v2247_v38  ;;  %v304_v47 = vld [vmem:[%s2049_s11 + $0x48] sm:$0xff]  ;;  %v303_v48 = vld [vmem:[%s2049_s11 + $0x40] sm:$0xff]  ;;  %p1769_p5 = scmp.ne.s32.totalorder %s2795_s26, %s1768_s6 }
  0x6f   : > { %1536 = vmatpush3.bf16.msk.msra.mxu0 %vm1533_vm2, %v1851_v12  ;;  %1573 = vmatpush3.bf16.msk.msra.mxu1 %vm1533_vm2, %v1851_v12  ;;  %vm2113_vm8 = vmpackc.low %vm496_vm6, %vm495_vm5  ;;  %v487_v28 = vadd.s32 96, %v2065_v2  ;;  %v488_v29 = vadd.s32 104, %v2065_v2  ;;  %v489_v33 = vadd.s32 112, %v2065_v2  ;;  %v490_v34 = vadd.s32 120, %v2065_v2  ;;  %v305_v59 = vld [vmem:[%s2049_s11 + $0x50] sm:$0xff]  ;;  %v298_v13 = vld [vmem:[%s2049_s11 + $0x18] sm:$0xff] }
  0x70   : > { %1538 = vmatprep.subr.msk.bf16.mxu0 %vm1537_vm7, %v1851_v12  ;;  %1566 = vmatprep.subr.msk.bf16.mxu1 %vm1537_vm7, %v1851_v12  ;;  %vm2133_vm11 = vmpackc.low %vm498_vm10, %vm497_vm9  ;;  %vm500_vm13 = vcmp.lt.s32.totalorder %v484_v19, %v2063_v1  ;;  %vm501_vm15 = vcmp.lt.s32.totalorder %v485_v23, %v2063_v1  ;;  %vm502_vm0 = vcmp.lt.s32.totalorder %v486_v24, %v2063_v1  ;;  %v395_v42 = vsub.f32 0.0, %v296_v39  ;;  %v297_v60 = vld [vmem:[%s2049_s11 + $0x10] sm:$0xff]  ;;  %v307_v30 = vld [vmem:[%s2049_s11 + $0x60] sm:$0xff]  ;;  %p1770_p8 = pnand %p1769_p5, %p2882_p6  ;;  %s1853_s16 = smov [#allocation8]  }
  0x71   : > { %347 = vrot.lane.b32.xlu1 %v2106_v15, %s1850_s23  ;;  %331 = vrot.lane.b32.xlu0 %v2109_v16, %s1850_s23  ;;  %vm2163_vm14 = vmpackc.low %vm500_vm13, %vm499_vm12  ;;  %vm503_vm2 = vcmp.lt.s32.totalorder %v487_v28, %v2063_v1  ;;  %vm504_vm3 = vcmp.lt.s32.totalorder %v488_v29, %v2063_v1  ;;  %vm505_vm5 = vcmp.lt.s32.totalorder %v489_v33, %v2063_v1  ;;  %v394_v44 = vsub.f32 0.0, %v295_v40  ;;  %v299_v33 = vld [vmem:[%s2049_s11 + $0x20] sm:$0xff]  ;;  %s1772_s27 = sshll.u32 %s1853_s16, 4  ;;  %s1773_s27 = int_to_ptr.vmem [resolvable:$false] %s1772_s27 }
  0x72   : > { %vm2193_vm1 = vmpackc.low %vm502_vm0, %vm501_vm15  ;;  %vm506_vm6 = vcmp.lt.s32.totalorder %v490_v34, %v2063_v1  ;;  %v403_v53 = vsub.f32 0.0, %v304_v47  ;;  %v402_v56 = vsub.f32 0.0, %v303_v48  ;;  %v404_v2 = vsub.f32 0.0, %v305_v59  ;;  %v308_v48 = vld [vmem:[%s2049_s11 + $0x68] sm:$0xff]  ;;  %p1771_p12 = pneg %p1770_p8  ;;  %s1774_s7 = scalar_lea.vmem %s1773_s27, 4096 }
  0x73   : > { %1540 = vmatpush3.bf16.msk.msra.mxu0 %vm1537_vm7, %v1851_v12  ;;  %1574 = vmatpush3.bf16.msk.msra.mxu1 %vm1537_vm7, %v1851_v12  ;;  %vm1557_vm4 = vmpackc.low %vm504_vm3, %vm503_vm2  ;;  %v396_v4 = vsub.f32 0.0, %v297_v60  ;;  %v397_v25 = vsub.f32 0.0, %v298_v13  ;;  %vm828_vm9 = vcmask 7168   ;;  %vm926_vm10 = vcmask 15368   ;;  %p1775_p13 = scmp.lt.s32.totalorder %s2795_s26, %s1773_s27  ;;  %p1776_p1 = scmp.lt.s32.totalorder %s1774_s7, %s1768_s6 }
  0x74   : > { %1542 = vmatprep.subr.msk.bf16.mxu0 %vm2113_vm8, %v1851_v12  ;;  %1567 = vmatprep.subr.msk.bf16.mxu1 %vm2113_vm8, %v1851_v12  ;;  %vm1561_vm7 = vmpackc.low %vm506_vm6, %vm505_vm5  ;;  %vm1089_vm12 = vcmask 31768  }
  0x75   : > { %349 = vrot.lane.b32.xlu1 %v2138_v21, %s1850_s23  ;;  %333 = vrot.lane.b32.xlu0 %v2141_v22, %s1850_s23  ;;  %p1777_p2 = por %p1776_p1, %p1775_p13 }
  0x77   : > { %1544 = vmatpush3.bf16.msk.msra.mxu0 %vm2113_vm8, %v1851_v12  ;;  %1575 = vmatpush3.bf16.msk.msra.mxu1 %vm2113_vm8, %v1851_v12  ;;  %vm361_vm8 = vcmp.eq.s32.totalorder %v2063_v1, 127  ;;  %p1778_p9 = pnand %p1777_p2, %p1771_p12 }
  0x78   : > { %1546 = vmatprep.subr.msk.bf16.mxu0 %vm2133_vm11, %v1851_v12  ;;  %1568 = vmatprep.subr.msk.bf16.mxu1 %vm2133_vm11, %v1851_v12 }
  0x79   : > { %351 = vrot.lane.b32.xlu1 %v2168_v26, %s1850_s23  ;;  %335 = vrot.lane.b32.xlu0 %v2171_v27, %s1850_s23 }
  0x7b   : > { %1548 = vmatpush3.bf16.msk.msra.mxu0 %vm2133_vm11, %v1851_v12  ;;  %1576 = vmatpush3.bf16.msk.msra.mxu1 %vm2133_vm11, %v1851_v12  ;;  %vm1024_vm11 = vcmask 23568  }
  0x7c   : > { %1550 = vmatprep.subr.msk.bf16.mxu0 %vm2163_vm14, %v1851_v12  ;;  %1569 = vmatprep.subr.msk.bf16.mxu1 %vm2163_vm14, %v1851_v12 }
  0x7d   : > { %353 = vrot.lane.b32.xlu1 %v2198_v31, %s1850_s23  ;;  %337 = vrot.lane.b32.xlu0 %v2201_v32, %s1850_s23 }
  0x7f   : > { %1552 = vmatpush3.bf16.msk.msra.mxu0 %vm2163_vm14, %v1851_v12  ;;  %1577 = vmatpush3.bf16.msk.msra.mxu1 %vm2163_vm14, %v1851_v12 }
  0x80   : > { %1554 = vmatprep.subr.msk.bf16.mxu0 %vm2193_vm1, %v1851_v12  ;;  %1570 = vmatprep.subr.msk.bf16.mxu1 %vm2193_vm1, %v1851_v12 }
  0x81   : > { %355 = vrot.lane.b32.xlu1 %v2224_v35, %s1850_s23  ;;  %339 = vrot.lane.b32.xlu0 %v2227_v36, %s1850_s23 }
  0x83   : > { %1556 = vmatpush3.bf16.msk.msra.mxu0 %vm2193_vm1, %v1851_v12  ;;  %1578 = vmatpush3.bf16.msk.msra.mxu1 %vm2193_vm1, %v1851_v12 }
  0x84   : > { %1558 = vmatprep.subr.msk.bf16.mxu0 %vm1557_vm4, %v1851_v12  ;;  %1571 = vmatprep.subr.msk.bf16.mxu1 %vm1557_vm4, %v1851_v12 }
  0x85   : > { %357 = vrot.lane.b32.xlu1 %v2244_v37, %s1850_s23  ;;  %341 = vrot.lane.b32.xlu0 %v2247_v38, %s1850_s23 }
  0x87   : > { %1560 = vmatpush3.bf16.msk.msra.mxu0 %vm1557_vm4, %v1851_v12  ;;  %1579 = vmatpush3.bf16.msk.msra.mxu1 %vm1557_vm4, %v1851_v12 }
  0x88   : > { %1562 = vmatprep.subr.msk.bf16.mxu0 %vm1561_vm7, %v1851_v12  ;;  %1572 = vmatprep.subr.msk.bf16.mxu1 %vm1561_vm7, %v1851_v12 }
  0x8b   : > { %1564 = vmatpush3.bf16.msk.msra.mxu0 %vm1561_vm7, %v1851_v12  ;;  %1580 = vmatpush3.bf16.msk.msra.mxu1 %vm1561_vm7, %v1851_v12  ;;  %v306_v12 = vld [vmem:[%s2049_s11 + $0x58] sm:$0xff] }
  0x8c   : > { %v405_v23 = vsub.f32 0.0, %v306_v12 }
  0xd9   : > { %v330_v41 = vpop.permute.xlu1 %329  ;;  %v328_v43 = vpop.permute.xlu0 %327 }
  0xda   : > { %v363_v45 = vsub.f32 %v330_v41, %v2076_v8  ;;  %v362_v46 = vsub.f32 %v328_v43, %v2079_v9  ;;  %v406_v43 = vsub.f32 0.0, %v307_v30 }
  0xdc   : > { %v379_v49 = vsel %vm361_vm8, 1e+10, %v363_v45  ;;  %v378_v50 = vsel %vm361_vm8, 1e+10, %v362_v46  ;;  %v398_v45 = vsub.f32 0.0, %v299_v33 }
  0xdd   : > { %v2270_v51 = vmul.f32 %v395_v42, %v379_v49  ;;  %v346_v52 = vpop.permute.xlu1 %345  ;;  %v344_v54 = vpop.permute.xlu0 %343  ;;  %v2272_v55 = vmul.f32 %v394_v44, %v378_v50  ;;  %v300_v49 = vld [vmem:[%s2049_s11 + $0x28] sm:$0xff] }
  0xde   : > { %v371_v57 = vsub.f32 %v346_v52, %v2086_v10  ;;  %v370_v58 = vsub.f32 %v344_v54, %v2089_v11  ;;  %v399_v59 = vsub.f32 0.0, %v300_v49 }
  0xdf   : > { %1509 = vmatprep.mubr.f32.mxu0 %v2272_v55  ;;  %v428_v49 = vmul.f32 1.442695, %v2270_v51 }
  0xe0   : > { %v387_v61 = vsel %vm361_vm8, 1e+10, %v371_v57  ;;  %1510 = vmatmul.mubr.f32.vlgmr.msra.gmra.mrb[0].mxu0 %v2270_v51  ;;  %v386_v62 = vsel %vm361_vm8, 1e+10, %v370_v58  ;;  %v407_v57 = vsub.f32 0.0, %v308_v48 }
  0xe1   : > { %v2284_v63 = vmul.f32 %v403_v53, %v387_v61  ;;  %v2286_v5 = vmul.f32 %v402_v56, %v386_v62  ;;  %v309_v62 = vld [vmem:[%s2049_s11 + $0x70] sm:$0xff]  ;;  %1648 = vpow2.f32 %v428_v49 }
  0xe2   : > { %v408_v12 = vsub.f32 0.0, %v309_v62 }
  0xe3   : > { %v348_v0 = vpop.permute.xlu1 %347  ;;  %v332_v3 = vpop.permute.xlu0 %331  ;;  %1521 = vmatprep.mubr.f32.mxu1 %v2286_v5 }
  0xe4   : > { %v372_v6 = vsub.f32 %v348_v0, %v2106_v15  ;;  %v364_v7 = vsub.f32 %v332_v3, %v2109_v16  ;;  %1522 = vmatmul.mubr.f32.vlgmr.msra.gmra.mrb[0].mxu1 %v2284_v63  ;;  %v301_v0 = vld [vmem:[%s2049_s11 + $0x30] sm:$0xff] }
  0xe6   : > { %v388_v14 = vsel %vm361_vm8, 1e+10, %v372_v6  ;;  %v380_v17 = vsel %vm361_vm8, 1e+10, %v364_v7 }
  0xe7   : > { %v2298_v18 = vmul.f32 %v404_v2, %v388_v14  ;;  %v2300_v19 = vmul.f32 %v396_v4, %v380_v17  ;;  %v350_v20 = vpop.permute.xlu1 %349  ;;  %v334_v24 = vpop.permute.xlu0 %333  ;;  %v400_v14 = vsub.f32 0.0, %v301_v0 }
  0xe8   : > { %v373_v28 = vsub.f32 %v350_v20, %v2138_v21  ;;  %v365_v29 = vsub.f32 %v334_v24, %v2141_v22  ;;  %v302_v24 = vld [vmem:[%s2049_s11 + $0x38] sm:$0xff] }
  0xe9   : > { %1512 = vmatprep.mubr.f32.mxu0 %v2300_v19  ;;  %1524 = vmatprep.mubr.f32.mxu1 %v2298_v18 }
  0xea   : > { %v389_v34 = vsel %vm361_vm8, 1e+10, %v373_v28  ;;  %v381_v39 = vsel %vm361_vm8, 1e+10, %v365_v29 }
  0xeb   : > { %v2312_v40 = vmul.f32 %v405_v23, %v389_v34  ;;  %v2314_v41 = vmul.f32 %v397_v25, %v381_v39  ;;  %v352_v42 = vpop.permute.xlu1 %351  ;;  %v336_v44 = vpop.permute.xlu0 %335  ;;  %v310_v23 = vld [vmem:[%s2049_s11 + $0x78] sm:$0xff] }
  0xec   : > { %v374_v46 = vsub.f32 %v352_v42, %v2168_v26  ;;  %v366_v47 = vsub.f32 %v336_v44, %v2171_v27  ;;  %v409_v34 = vsub.f32 0.0, %v310_v23  ;;  %v401_v42 = vsub.f32 0.0, %v302_v24 }
  0xed   : > { %1513 = vmatmul.mubr.f32.gmra.mrb[2].mxu0 %v2314_v41  ;;  %1525 = vmatmul.mubr.f32.gmra.mrb[2].mxu1 %v2312_v40  ;;  %v448_v1 = vmul.f32 1.442695, %v2312_v40 }
  0xee   : > { %v390_v50 = vsel %vm361_vm8, 1e+10, %v374_v46  ;;  %v382_v52 = vsel %vm361_vm8, 1e+10, %v366_v47 }
  0xef   : > { %v422_v53 = vmul.f32 %v406_v43, %v390_v50  ;;  %v414_v54 = vmul.f32 %v398_v45, %v382_v52  ;;  %v354_v56 = vpop.permute.xlu1 %353  ;;  %v338_v58 = vpop.permute.xlu0 %337  ;;  %v426_v50 = vmul.f32 1.442695, %v2272_v55  ;;  %v444_v52 = vmul.f32 1.442695, %v2284_v63 }
  0xf0   : > { %v375_v60 = vsub.f32 %v354_v56, %v2198_v31  ;;  %v367_v61 = vsub.f32 %v338_v58, %v2201_v32  ;;  %v442_v56 = vmul.f32 1.442695, %v2286_v5  ;;  %v430_v58 = vmul.f32 1.442695, %v2300_v19  ;;  %v1649_v19 = vpop.eup %1648 }
  0xf1   : > { %1515 = vmatprep.mubr.f32.mxu0 %v414_v54  ;;  %1527 = vmatprep.mubr.f32.mxu1 %v422_v53  ;;  %1650 = vpow2.f32 %v426_v50  ;;  %v450_v51 = vmul.f32 1.442695, %v422_v53  ;;  %v434_v63 = vmul.f32 1.442695, %v414_v54  ;;  %v459_v24 = vsub.f32 1.0, %v1649_v19 }
  0xf2   : > { %v391_v2 = vsel %vm361_vm8, 1e+10, %v375_v60  ;;  %v383_v3 = vsel %vm361_vm8, 1e+10, %v367_v61  ;;  %1652 = vpow2.f32 %v444_v52 }
  0xf3   : > { %v423_v4 = vmul.f32 %v407_v57, %v391_v2  ;;  %v415_v6 = vmul.f32 %v399_v59, %v383_v3  ;;  %v356_v7 = vpop.permute.xlu1 %355  ;;  %v340_v13 = vpop.permute.xlu0 %339  ;;  %v446_v57 = vmul.f32 1.442695, %v2298_v18  ;;  %1654 = vpow2.f32 %v442_v56 }
  0xf4   : > { %v376_v17 = vsub.f32 %v356_v7, %v2224_v35  ;;  %v368_v20 = vsub.f32 %v340_v13, %v2227_v36  ;;  %v432_v59 = vmul.f32 1.442695, %v2314_v41 }
  0xf5   : > { %1516 = vmatmul.mubr.f32.gmra.mrb[4].mxu0 %v415_v6  ;;  %1528 = vmatmul.mubr.f32.gmra.mrb[4].mxu1 %v423_v4  ;;  %1656 = vpow2.f32 %v446_v57  ;;  %v452_v18 = vmul.f32 1.442695, %v423_v4  ;;  %v436_v41 = vmul.f32 1.442695, %v415_v6  ;;  %v2364_v6 = vld [vmem:[%s2361_s19] sm:$0xff]  }
  0xf6   : > { %v392_v25 = vsel %vm361_vm8, 1e+10, %v376_v17  ;;  %v384_v28 = vsel %vm361_vm8, 1e+10, %v368_v20  ;;  %1658 = vpow2.f32 %v430_v58 }
  0xf7   : > { %v424_v29 = vmul.f32 %v408_v12, %v392_v25  ;;  %v416_v30 = vmul.f32 %v400_v14, %v384_v28  ;;  %v358_v33 = vpop.permute.xlu1 %357  ;;  %v342_v39 = vpop.permute.xlu0 %341  ;;  %1660 = vpow2.f32 %v448_v1 }
  0xf8   : > { %v377_v43 = vsub.f32 %v358_v33, %v2244_v37  ;;  %v369_v44 = vsub.f32 %v342_v39, %v2247_v38  ;;  %1662 = vpow2.f32 %v432_v59 }
  0xf9   : > { %1518 = vmatprep.mubr.f32.mxu0 %v416_v30  ;;  %1530 = vmatprep.mubr.f32.mxu1 %v424_v29  ;;  %1664 = vpow2.f32 %v450_v51  ;;  %v454_v3 = vmul.f32 1.442695, %v424_v29  ;;  %v438_v12 = vmul.f32 1.442695, %v416_v30 }
  0xfa   : > { %v393_v45 = vsel %vm361_vm8, 1e+10, %v377_v43  ;;  %v385_v46 = vsel %vm361_vm8, 1e+10, %v369_v44 }
  0xfb   : > { %v425_v47 = vmul.f32 %v409_v34, %v393_v45  ;;  %v417_v48 = vmul.f32 %v401_v42, %v385_v46  ;;  %v1651_v62 = vpop.eup %1650  ;;  %v1329_v42 = vunpack.c.h.bf16 %v2364_v6 }
  0xfc   : > { %v1653_v2 = vpop.eup %1652  ;;  %v458_v44 = vsub.f32 1.0, %v1651_v62 }
  0xfd   : > { %1519 = vmatmul.mubr.f32.gmra.mrb[6].mxu0 %v417_v48  ;;  %1531 = vmatmul.mubr.f32.gmra.mrb[6].mxu1 %v425_v47  ;;  %v1655_v54 = vpop.eup %1654  ;;  %v456_v4 = vmul.f32 1.442695, %v425_v47  ;;  %v440_v17 = vmul.f32 1.442695, %v417_v48  ;;  %v1425_v47 = vld [vmem:[%s2361_s19 + $0x20] sm:$0xff]   ;;  %v467_v57 = vsub.f32 1.0, %v1653_v2 }
  0xfe   : > { %v1345_v1 = vunpack.c.h.bf16 %v1425_v47  ;;  %v466_v51 = vsub.f32 1.0, %v1655_v54 }
  0xff   : > { %v2357_v13 = vpop.eup %1656 }
 0x100   : > { %v2359_v14 = vpop.eup %1658 }
 0x101   : > { %v2366_v20 = vpop.eup %1660  ;;  %v460_v19 = vsub.f32 1.0, %v2359_v14 }
 0x102   : > { %v2368_v23 = vpop.eup %1662 }
 0x103   : > { %v2370_v29 = vpop.eup %1664 }
 0x1b3   : > { %v1511_v55 = vpop.f32.mrb[0].mxu0 }
 0x1b4   : > { %v686_v5 = vmul.f32 1.442695, %v1511_v55  ;;  %v605_v60 = vpop.f32.mrb[1].mxu0  ;;  %v1344_v55 = vunpack.c.l.bf16 %v1425_v47 }
 0x1b5   : > { %v684_v61 = vmul.f32 1.442695, %v605_v60 }
 0x1b6   : > { %1666 = vpow2.f32 %v686_v5 }
 0x1b7   : > { %1668 = vpow2.f32 %v684_v61  ;;  %v1523_v40 = vpop.f32.mrb[0].mxu1  ;;  %v468_v61 = vsub.f32 1.0, %v2357_v13 }
 0x1b8   : > { %1670 = vpow2.f32 %v434_v63  ;;  %v702_v0 = vmul.f32 1.442695, %v1523_v40  ;;  %v645_v53 = vpop.f32.mrb[1].mxu1  ;;  %v1429_v63 = vld [vmem:[%s2361_s19 + $0x40] sm:$0xff]  }
 0x1b9   : > { %1672 = vpow2.f32 %v452_v18  ;;  %v700_v7 = vmul.f32 1.442695, %v645_v53 }
 0x1ba   : > { %1674 = vpow2.f32 %v702_v0 }
 0x1bb   : > { %1676 = vpow2.f32 %v700_v7 }
 0x1bc   : > { %1678 = vpow2.f32 %v436_v41 }
 0x1bd   : > { %1680 = vpow2.f32 %v454_v3 }
 0x1be   : > { %1682 = vpow2.f32 %v438_v12  ;;  %v1361_v12 = vunpack.c.h.bf16 %v1429_v63 }
 0x1bf   : > { %1684 = vpow2.f32 %v456_v4 }
 0x1c0   : > { %v1514_v25 = vpop.f32.mrb[2].mxu0  ;;  %v1526_v28 = vpop.f32.mrb[2].mxu1  ;;  %1686 = vpow2.f32 %v440_v17 }
 0x1c1   : > { %v690_v30 = vmul.f32 1.442695, %v1514_v25  ;;  %v706_v33 = vmul.f32 1.442695, %v1526_v28  ;;  %v615_v34 = vpop.f32.mrb[3].mxu0  ;;  %v655_v39 = vpop.f32.mrb[3].mxu1  ;;  %v1360_v28 = vunpack.c.l.bf16 %v1429_v63 }
 0x1c2   : > { %v1667_v43 = vpop.eup %1666  ;;  %v688_v45 = vmul.f32 1.442695, %v615_v34  ;;  %v704_v46 = vmul.f32 1.442695, %v655_v39  ;;  %v469_v34 = vsub.f32 1.0, %v2366_v20  ;;  %v461_v39 = vsub.f32 1.0, %v2368_v23 }
 0x1c3   : > { %v1669_v48 = vpop.eup %1668  ;;  %1688 = vpow2.f32 %v690_v30  ;;  %v2374_v49 = vmul.f32 %v1667_v43, %v459_v24  ;;  %v2399_v30 = vld [vmem:[%s2361_s19 + $0x60] sm:$0xff]   ;;  %v1443_v63 = vld [vmem:[%s2361_s19 + $0xb0] sm:$0xff]  }
 0x1c4   : > { %v2376_v50 = vpop.eup %1670  ;;  %1690 = vpow2.f32 %v706_v33  ;;  %v2378_v52 = vmul.f32 %v1669_v48, %v458_v44  ;;  %v1377_v23 = vunpack.c.h.bf16 %v2399_v30  ;;  %v2414_v48 = vld [vmem:[%s2361_s19 + $0x80] sm:$0xff]  }
 0x1c5   : > { %v2380_v56 = vpop.eup %1672  ;;  %1692 = vpow2.f32 %v688_v45  ;;  %v781_v58 = vmul.f32 %v1329_v42, %v2374_v49  ;;  %v470_v42 = vsub.f32 1.0, %v2370_v29  ;;  %v462_v44 = vsub.f32 1.0, %v2376_v50 }
 0x1c6   : > { %v1675_v59 = vpop.eup %1674  ;;  %1694 = vpow2.f32 %v704_v46  ;;  %v471_v45 = vsub.f32 1.0, %v2380_v56  ;;  %v879_v20 = vmul.f32 %v1361_v12, %v2374_v49  ;;  %v1393_v12 = vunpack.c.h.bf16 %v2414_v48  ;;  %v1424_v56 = vld [vmem:[%s2361_s19 + $0x18] sm:$0xff]  }
 0x1c7   : > { %v1677_v5 = vpop.eup %1676  ;;  %798 = vadd.xlane.f32.xlu1 %v781_v58  ;;  %v2384_v60 = vmul.f32 %v1675_v59, %v467_v57  ;;  %v1852_v57 = vmov 0.0   ;;  %v1376_v59 = vunpack.c.l.bf16 %v2399_v30  ;;  %v1439_v30 = vld [vmem:[%s2361_s19 + $0x90] sm:$0xff]  }
 0x1c8   : > { %v2386_v18 = vpop.eup %1678  ;;  %v1517_v40 = vpop.f32.mrb[4].mxu0  ;;  %v2390_v41 = vmul.f32 %v1677_v5, %v466_v51  ;;  %733 = vst [vmem:[%s2417_s29 + $0x8] sm:$0xff] %v1852_v57  ;;  %732 = vst [vmem:[%s2417_s29] sm:$0xff] %v1852_v57 }
 0x1c9   : > { %v1529_v62 = vpop.f32.mrb[4].mxu1  ;;  %v2392_v0 = vpop.eup %1680  ;;  %v694_v53 = vmul.f32 1.442695, %v1517_v40  ;;  %v789_v54 = vmul.f32 %v1345_v1, %v2384_v60  ;;  %v463_v47 = vsub.f32 1.0, %v2386_v18  ;;  %734 = vst [vmem:[%s2417_s29 + $0x10] sm:$0xff] %v1852_v57  ;;  %735 = vst [vmem:[%s2417_s29 + $0x18] sm:$0xff] %v1852_v57  ;;  %v878_v1 = vmul.f32 %v1360_v28, %v2378_v52 }
 0x1ca   : > { %v710_v2 = vmul.f32 1.442695, %v1529_v62  ;;  %v625_v3 = vpop.f32.mrb[5].mxu0  ;;  %v665_v7 = vpop.f32.mrb[5].mxu1  ;;  %v788_v25 = vmul.f32 %v1344_v55, %v2390_v41  ;;  %736 = vst [vmem:[%s2417_s29 + $0x20] sm:$0xff] %v1852_v57  ;;  %737 = vst [vmem:[%s2417_s29 + $0x28] sm:$0xff] %v1852_v57  ;;  %v886_v14 = vmul.f32 %v1376_v59, %v2390_v41  ;;  %v977_v59 = vmul.f32 %v1393_v12, %v2374_v49 }
 0x1cb   : > { %v2395_v4 = vpop.eup %1682  ;;  %v692_v17 = vmul.f32 1.442695, %v625_v3  ;;  %v708_v24 = vmul.f32 1.442695, %v665_v7  ;;  %1696 = vpow2.f32 %v694_v53  ;;  %814 = vadd.xlane.f32.xlu0 %v789_v54  ;;  %738 = vst [vmem:[%s2417_s29 + $0x30] sm:$0xff] %v1852_v57  ;;  %739 = vst [vmem:[%s2417_s29 + $0x38] sm:$0xff] %v1852_v57  ;;  %v1042_v40 = vmul.f32 %v2374_v49, %v2076_v8 }
 0x1cc   : > { %v2401_v33 = vpop.eup %1684  ;;  %1698 = vpow2.f32 %v710_v2  ;;  %812 = vadd.xlane.f32.xlu1 %v788_v25  ;;  %740 = vst [vmem:[%s2417_s29 + $0x40] sm:$0xff] %v1852_v57  ;;  %741 = vst [vmem:[%s2417_s29 + $0x48] sm:$0xff] %v1852_v57  ;;  %v2443_v62 = vld [vmem:[%s2361_s19 + $0xa0] sm:$0xff]   ;;  %v2455_v25 = vld [vmem:[%s2361_s19 + $0x30] sm:$0xff]   ;;  %v1050_v36 = vmul.f32 %v2384_v60, %v2086_v10 }
 0x1cd   : > { %v2406_v43 = vpop.eup %1686  ;;  %1700 = vpow2.f32 %v692_v17  ;;  %742 = vst [vmem:[%s2417_s29 + $0x50] sm:$0xff] %v1852_v57  ;;  %743 = vst [vmem:[%s2417_s29 + $0x58] sm:$0xff] %v1852_v57  ;;  %v1392_v17 = vunpack.c.l.bf16 %v2414_v48  ;;  %v1431_v28 = vld [vmem:[%s2361_s19 + $0x50] sm:$0xff]   ;;  %v2872_v49 = vsub.f32 1.0, %v2401_v33 }
 0x1ce   : > { %v1689_v46 = vpop.eup %1688  ;;  %744 = vst [vmem:[%s2417_s29 + $0x60] sm:$0xff] %v1852_v57  ;;  %745 = vst [vmem:[%s2417_s29 + $0x68] sm:$0xff] %v1852_v57  ;;  %1702 = vpow2.f32 %v708_v24  ;;  %v1368_v13 = vunpack.c.l.bf16 %v1431_v28 }
 0x1cf   : > { %746 = vst [vmem:[%s2417_s29 + $0x70] sm:$0xff] %v1852_v57  ;;  %747 = vst [vmem:[%s2417_s29 + $0x78] sm:$0xff] %v1852_v57  ;;  %v1691_v58 = vpop.eup %1690  ;;  %v2437_v51 = vmul.f32 %v1689_v46, %v461_v39  ;;  %896 = vadd.xlane.f32.xlu0 %v879_v20  ;;  %v887_v57 = vmul.f32 %v1377_v23, %v2384_v60  ;;  %v1353_v23 = vunpack.c.h.bf16 %v2455_v25 }
 0x1d0   : > { %v1693_v55 = vpop.eup %1692  ;;  %v2445_v53 = vmul.f32 %v1691_v58, %v469_v34  ;;  %v1520_v7 = vpop.f32.mrb[6].mxu0  ;;  %894 = vadd.xlane.f32.xlu1 %v878_v1 }
 0x1d1   : > { %v1695_v2 = vpop.eup %1694  ;;  %v1532_v54 = vpop.f32.mrb[6].mxu1  ;;  %v2452_v24 = vmul.f32 %v1693_v55, %v460_v19  ;;  %v698_v34 = vmul.f32 1.442695, %v1520_v7  ;;  %v1435_v55 = vld [vmem:[%s2361_s19 + $0x70] sm:$0xff]   ;;  %v1409_v7 = vunpack.c.h.bf16 %v2443_v62  ;;  %v1417_v19 = vunpack.c.h.bf16 %v1443_v63 }
 0x1d2   : > { %v714_v39 = vmul.f32 1.442695, %v1532_v54  ;;  %v635_v46 = vpop.f32.mrb[7].mxu0  ;;  %v675_v20 = vpop.f32.mrb[7].mxu1  ;;  %v2462_v58 = vmul.f32 %v1695_v2, %v468_v61  ;;  %v1408_v54 = vunpack.c.l.bf16 %v2443_v62  ;;  %v1369_v61 = vunpack.c.h.bf16 %v1431_v28  ;;  %v2478_v28 = vld [vmem:[%s2361_s19 + $0x28] sm:$0xff]  }
 0x1d3   : > { %v696_v48 = vmul.f32 1.442695, %v635_v46  ;;  %v712_v1 = vmul.f32 1.442695, %v675_v20  ;;  %1704 = vpow2.f32 %v698_v34  ;;  %912 = vadd.xlane.f32.xlu0 %v887_v57  ;;  %v1401_v2 = vunpack.c.h.bf16 %v1439_v30 }
 0x1d4   : > { %1706 = vpow2.f32 %v714_v39  ;;  %910 = vadd.xlane.f32.xlu1 %v886_v14  ;;  %v1385_v20 = vunpack.c.h.bf16 %v1435_v55  ;;  %v976_v57 = vmul.f32 %v1392_v17, %v2378_v52  ;;  %v1400_v39 = vunpack.c.l.bf16 %v1439_v30 }
 0x1d5   : > { %v1697_v46 = vpop.eup %1696  ;;  %1708 = vpow2.f32 %v696_v48  ;;  %v1352_v48 = vunpack.c.l.bf16 %v2455_v25  ;;  %v1384_v12 = vunpack.c.l.bf16 %v1435_v55  ;;  %v1416_v17 = vunpack.c.l.bf16 %v1443_v63 }
 0x1d6   : > { %v1699_v34 = vpop.eup %1698  ;;  %1710 = vpow2.f32 %v712_v1  ;;  %v2475_v62 = vmul.f32 %v1697_v46, %v463_v47  ;;  %v985_v47 = vmul.f32 %v1409_v7, %v2384_v60  ;;  %v1428_v7 = vld [vmem:[%s2361_s19 + $0x38] sm:$0xff]  }
 0x1d7   : > { %v1701_v14 = vpop.eup %1700  ;;  %994 = vadd.xlane.f32.xlu0 %v977_v59  ;;  %v2483_v1 = vmul.f32 %v1699_v34, %v471_v45  ;;  %v1440_v46 = vld [vmem:[%s2361_s19 + $0x98] sm:$0xff]   ;;  %v1348_v59 = vunpack.c.l.bf16 %v2478_v28 }
 0x1d8   : > { %v1703_v18 = vpop.eup %1702  ;;  %992 = vadd.xlane.f32.xlu1 %v976_v57  ;;  %v2488_v30 = vmul.f32 %v1701_v14, %v462_v44  ;;  %v2491_v25 = vmul.f32 %v1369_v61, %v2475_v62  ;;  %v2494_v55 = vmul.f32 %v1401_v2, %v2475_v62  ;;  %v1432_v61 = vld [vmem:[%s2361_s19 + $0x58] sm:$0xff]   ;;  %v984_v2 = vmul.f32 %v1408_v54, %v2390_v41 }
 0x1d9   : > { %2870 = vst [vmem:[#allocation20_spill] sm:$0xff] %v2483_v1  ;;  %v2499_v45 = vmul.f32 %v1703_v18, %v470_v42  ;;  %v2502_v63 = vmul.f32 %v1353_v23, %v2483_v1  ;;  %v2505_v50 = vmul.f32 %v1385_v20, %v2483_v1  ;;  %v2508_v44 = vmul.f32 %v1417_v19, %v2483_v1  ;;  %v1436_v23 = vld [vmem:[%s2361_s19 + $0x78] sm:$0xff]  }
 0x1da   : > { %v2516_v29 = vmul.f32 %v1368_v13, %v2488_v30  ;;  %v2519_v42 = vmul.f32 %v1400_v39, %v2488_v30  ;;  %v1444_v34 = vld [vmem:[%s2361_s19 + $0xb8] sm:$0xff]   ;;  %v1341_v54 = vunpack.c.h.bf16 %v1424_v56  ;;  %v1340_v14 = vunpack.c.l.bf16 %v1424_v56 }
 0x1db   : > { %1010 = vadd.xlane.f32.xlu0 %v985_v47  ;;  %v2524_v20 = vmul.f32 %v1352_v48, %v2499_v45  ;;  %v2527_v19 = vmul.f32 %v1384_v12, %v2499_v45  ;;  %v2530_v57 = vmul.f32 %v1416_v17, %v2499_v45  ;;  %v1357_v13 = vunpack.c.h.bf16 %v1428_v7 }
 0x1dc   : > { %1008 = vadd.xlane.f32.xlu1 %v984_v2  ;;  %v1373_v18 = vunpack.c.h.bf16 %v1432_v61  ;;  %v1405_v5 = vunpack.c.h.bf16 %v1440_v46  ;;  %v1356_v47 = vunpack.c.l.bf16 %v1428_v7  ;;  %v1389_v3 = vunpack.c.h.bf16 %v1436_v23 }
 0x1dd   : > { %v1705_v39 = vpop.eup %1704  ;;  %v1421_v48 = vunpack.c.h.bf16 %v1444_v34  ;;  %v1041_v12 = vmul.f32 %v2378_v52, %v2079_v9  ;;  %v1372_v38 = vunpack.c.l.bf16 %v1432_v61  ;;  %v2871_v17 = vsub.f32 1.0, %v2406_v43 }
 0x1de   : > { %v1707_v37 = vpop.eup %1706  ;;  %v1404_v56 = vunpack.c.l.bf16 %v1440_v46  ;;  %v1388_v8 = vunpack.c.l.bf16 %v1436_v23  ;;  %v1420_v1 = vunpack.c.l.bf16 %v1444_v34  ;;  %v2873_v9 = vsub.f32 1.0, %v2395_v4  ;;  %v1422_v34 = vld [vmem:[%s2361_s19 + $0x8] sm:$0xff]  }
 0x1df   : > { %v2538_v35 = vmul.f32 %v1705_v39, %v2871_v17  ;;  %v1709_v2 = vpop.eup %1708  ;;  %1059 = vadd.xlane.f32.xlu0 %v1042_v40  ;;  %v2544_v7 = vmul.f32 %v1707_v37, %v2872_v49  ;;  %v2874_v37 = vsub.f32 1.0, %v2392_v0  ;;  %v1049_v23 = vmul.f32 %v2390_v41, %v2089_v11  ;;  %v1434_v39 = vld [vmem:[%s2361_s19 + $0x68] sm:$0xff]  }
 0x1e0   : > { %v1711_v31 = vpop.eup %1710  ;;  %1057 = vadd.xlane.f32.xlu1 %v1041_v12  ;;  %v2548_v43 = vmul.f32 %v1709_v2, %v2873_v9  ;;  %v1380_v12 = vunpack.c.l.bf16 %v1434_v39  ;;  %v1438_v17 = vld [vmem:[%s2361_s19 + $0x88] sm:$0xff]   ;;  %v1381_v49 = vunpack.c.h.bf16 %v1434_v39  ;;  %v1051_v39 = vmul.f32 %v2462_v58, %v2106_v15 }
 0x1e1   : > { %v2551_v61 = vmul.f32 %v1341_v54, %v2538_v35  ;;  %v2554_v40 = vmul.f32 %v1373_v18, %v2538_v35  ;;  %v2557_v10 = vmul.f32 %v1405_v5, %v2538_v35  ;;  %v2561_v60 = vmul.f32 %v1711_v31, %v2874_v37  ;;  %v1442_v2 = vld [vmem:[%s2361_s19 + $0xa8] sm:$0xff]  }
 0x1e2   : > { %v2564_v33 = vmul.f32 %v1357_v13, %v2544_v7  ;;  %v2567_v4 = vmul.f32 %v1389_v3, %v2544_v7  ;;  %v2570_v46 = vmul.f32 %v1421_v48, %v2544_v7  ;;  %v2576_v5 = vmul.f32 %v1340_v14, %v2548_v43  ;;  %v1430_v3 = vld [vmem:[%s2361_s19 + $0x48] sm:$0xff]  }
 0x1e3   : > { %v2579_v31 = vmul.f32 %v1372_v38, %v2548_v43  ;;  %v2582_v0 = vmul.f32 %v1404_v56, %v2548_v43  ;;  %1075 = vadd.xlane.f32.xlu0 %v1050_v36  ;;  %v2586_v54 = vmul.f32 %v1356_v47, %v2561_v60  ;;  %v2589_v13 = vmul.f32 %v1388_v8, %v2561_v60 }
 0x1e4   : > { %v2592_v11 = vmul.f32 %v1420_v1, %v2561_v60  ;;  %1073 = vadd.xlane.f32.xlu1 %v1049_v23  ;;  %v2875_v38 = vunpack.c.l.bf16 %v2364_v6  ;;  %v1333_v14 = vunpack.c.h.bf16 %v1422_v34  ;;  %v790_v18 = vmul.f32 %v1348_v59, %v2462_v58 }
 0x1e5   : > { %v1364_v36 = vunpack.c.l.bf16 %v1430_v3  ;;  %v1349_v48 = vunpack.c.h.bf16 %v2478_v28  ;;  %v888_v59 = vmul.f32 %v1380_v12, %v2462_v58  ;;  %v1396_v56 = vunpack.c.l.bf16 %v1438_v17 }
 0x1e6   : > { %v780_v41 = vmul.f32 %v2875_v38, %v2378_v52  ;;  %v783_v47 = vmul.f32 %v1333_v14, %v2437_v51  ;;  %v1365_v52 = vunpack.c.h.bf16 %v1430_v3  ;;  %v1412_v9 = vunpack.c.l.bf16 %v1442_v2 }
 0x1e7   : > { %v880_v1 = vmul.f32 %v1364_v36, %v2452_v24  ;;  %v791_v6 = vmul.f32 %v1349_v48, %v2445_v53  ;;  %v978_v28 = vmul.f32 %v1396_v56, %v2452_v24  ;;  %v889_v37 = vmul.f32 %v1381_v49, %v2445_v53 }
 0x1e8   : > { %796 = vadd.xlane.f32.xlu0 %v780_v41  ;;  %816 = vadd.xlane.f32.xlu1 %v790_v18  ;;  %v881_v8 = vmul.f32 %v1365_v52, %v2437_v51  ;;  %v1397_v23 = vunpack.c.h.bf16 %v1438_v17  ;;  %v986_v3 = vmul.f32 %v1412_v9, %v2462_v58  ;;  %v1413_v41 = vunpack.c.h.bf16 %v1442_v2  ;;  %v1423_v18 = vld [vmem:[%s2361_s19 + $0x10] sm:$0xff]  }
 0x1e9   : > { %v1043_v14 = vmul.f32 %v2452_v24, %v2109_v16  ;;  %v1044_v48 = vmul.f32 %v2437_v51, %v2141_v22  ;;  %v1052_v16 = vmul.f32 %v2445_v53, %v2138_v21  ;;  %v1332_v12 = vunpack.c.l.bf16 %v1422_v34 }
 0x1ea   : > { %v979_v38 = vmul.f32 %v1397_v23, %v2437_v51  ;;  %v987_v36 = vmul.f32 %v1413_v41, %v2445_v53  ;;  %v1337_v15 = vunpack.c.h.bf16 %v1423_v18  ;;  %v1045_v21 = vmul.f32 %v2488_v30, %v2171_v27  ;;  %v2876_v27 = vld [vmem:[#allocation15_spill] sm:$0xff]  ;;  %v2877_v53 = vld [vmem:[#allocation20_spill] sm:$0xff] }
 0x1eb   : > { %v782_v17 = vmul.f32 %v1332_v12, %v2452_v24  ;;  %v1053_v22 = vmul.f32 %v2499_v45, %v2168_v26  ;;  %v1046_v51 = vmul.f32 %v2475_v62, %v2201_v32  ;;  %v1054_v24 = vmul.f32 %v2877_v53, %v2876_v27  ;;  %v2878_v26 = vld [vmem:[#allocation17_spill] sm:$0xff]  ;;  %v2881_v45 = vld [vmem:[#allocation18_spill] sm:$0xff] }
 0x1ec   : > { %802 = vadd.xlane.f32.xlu0 %v783_v47  ;;  %898 = vadd.xlane.f32.xlu1 %v880_v1  ;;  %v1336_v47 = vunpack.c.l.bf16 %v1423_v18  ;;  %v785_v58 = vmul.f32 %v1337_v15, %v2475_v62  ;;  %v1047_v32 = vmul.f32 %v2548_v43, %v2878_v26  ;;  %v2879_v62 = vld [vmem:[#allocation16_spill] sm:$0xff] }
 0x1ee   : > { %v784_v1 = vmul.f32 %v1336_v47, %v2488_v30  ;;  %v1055_v30 = vmul.f32 %v2561_v60, %v2879_v62 }
 0x1f0   : > { %818 = vadd.xlane.f32.xlu0 %v791_v6  ;;  %914 = vadd.xlane.f32.xlu1 %v888_v59 }
 0x1f4   : > { %900 = vadd.xlane.f32.xlu0 %v881_v8  ;;  %996 = vadd.xlane.f32.xlu1 %v978_v28 }
 0x1f8   : > { %916 = vadd.xlane.f32.xlu0 %v889_v37  ;;  %1012 = vadd.xlane.f32.xlu1 %v986_v3 }
 0x1fc   : > { %998 = vadd.xlane.f32.xlu0 %v979_v38  ;;  %1061 = vadd.xlane.f32.xlu1 %v1043_v14 }
 0x200   : > { %1014 = vadd.xlane.f32.xlu0 %v987_v36  ;;  %1077 = vadd.xlane.f32.xlu1 %v1051_v39 }
 0x204   : > { %1063 = vadd.xlane.f32.xlu0 %v1044_v48  ;;  %804 = vadd.xlane.f32.xlu1 %v784_v1 }
 0x208   : > { %1079 = vadd.xlane.f32.xlu0 %v1052_v16  ;;  %820 = vadd.xlane.f32.xlu1 %v2524_v20 }
 0x20c   : > { %800 = vadd.xlane.f32.xlu0 %v782_v17  ;;  %902 = vadd.xlane.f32.xlu1 %v2516_v29 }
 0x210   : > { %806 = vadd.xlane.f32.xlu0 %v785_v58  ;;  %918 = vadd.xlane.f32.xlu1 %v2527_v19 }
 0x214   : > { %822 = vadd.xlane.f32.xlu0 %v2502_v63  ;;  %1000 = vadd.xlane.f32.xlu1 %v2519_v42  ;;  %v1056_v63 = vmul.f32 %v2544_v7, %v2881_v45 }
 0x218   : > { %904 = vadd.xlane.f32.xlu0 %v2491_v25  ;;  %1016 = vadd.xlane.f32.xlu1 %v2530_v57  ;;  %v2880_v25 = vld [vmem:[#allocation19_spill] sm:$0xff] }
 0x21c   : > { %920 = vadd.xlane.f32.xlu0 %v2505_v50  ;;  %1065 = vadd.xlane.f32.xlu1 %v1045_v21 }
 0x220   : > { %1002 = vadd.xlane.f32.xlu0 %v2494_v55  ;;  %1081 = vadd.xlane.f32.xlu1 %v1053_v22  ;;  %v1048_v55 = vmul.f32 %v2538_v35, %v2880_v25 }
 0x224   : > { %1018 = vadd.xlane.f32.xlu0 %v2508_v44  ;;  %808 = vadd.xlane.f32.xlu1 %v2576_v5 }
 0x228   : > { %1067 = vadd.xlane.f32.xlu0 %v1046_v51  ;;  %824 = vadd.xlane.f32.xlu1 %v2586_v54 }
 0x22c   : > { %1083 = vadd.xlane.f32.xlu0 %v1054_v24  ;;  %906 = vadd.xlane.f32.xlu1 %v2579_v31 }
 0x230   : > { %810 = vadd.xlane.f32.xlu0 %v2551_v61  ;;  %922 = vadd.xlane.f32.xlu1 %v2589_v13 }
 0x234   : > { %826 = vadd.xlane.f32.xlu0 %v2564_v33  ;;  %1004 = vadd.xlane.f32.xlu1 %v2582_v0 }
 0x238   : > { %908 = vadd.xlane.f32.xlu0 %v2554_v40  ;;  %1020 = vadd.xlane.f32.xlu1 %v2592_v11 }
 0x23c   : > { %924 = vadd.xlane.f32.xlu0 %v2567_v4  ;;  %1069 = vadd.xlane.f32.xlu1 %v1047_v32 }
 0x240   : > { %1006 = vadd.xlane.f32.xlu0 %v2557_v10  ;;  %1085 = vadd.xlane.f32.xlu1 %v1055_v30 }
 0x244   : > { %1022 = vadd.xlane.f32.xlu0 %v2570_v46 }
 0x248   : > { %1071 = vadd.xlane.f32.xlu0 %v1048_v55 }
 0x24c   : > { %1087 = vadd.xlane.f32.xlu0 %v1056_v63 }
 0x254   : > { %v799_v50 = vpop.xlane.xlu1 %798 }
 0x255   : > { %830 = vst.msk [vmem:[%s2417_s29 + $0x8] sm:$0xff] %vm828_vm9, %v799_v50 }
 0x258   : > { %v815_v44 = vpop.xlane.xlu0 %814 }
 0x259   : > { %838 = vst.msk [vmem:[%s2417_s29 + $0x48] sm:$0xff] %vm828_vm9, %v815_v44  ;;  %v813_v29 = vpop.xlane.xlu1 %812 }
 0x25a   : > { %837 = vst.msk [vmem:[%s2417_s29 + $0x40] sm:$0xff] %vm828_vm9, %v813_v29 }
 0x25c   : > { %v897_v35 = vpop.xlane.xlu0 %896 }
 0x25d   : > { %928 = vst.msk [vmem:[%s2417_s29 + $0x8] sm:$0xff] %vm926_vm10, %v897_v35  ;;  %v895_v42 = vpop.xlane.xlu1 %894 }
 0x260   : > { %v913_v20 = vpop.xlane.xlu0 %912 }
 0x261   : > { %936 = vst.msk [vmem:[%s2417_s29 + $0x48] sm:$0xff] %vm926_vm10, %v913_v20  ;;  %v911_v19 = vpop.xlane.xlu1 %910 }
 0x262   : > { %935 = vst.msk [vmem:[%s2417_s29 + $0x40] sm:$0xff] %vm926_vm10, %v911_v19 }
 0x264   : > { %v995_v57 = vpop.xlane.xlu0 %994 }
 0x265   : > { %1026 = vst.msk [vmem:[%s2417_s29 + $0x8] sm:$0xff] %vm1024_vm11, %v995_v57  ;;  %v993_v7 = vpop.xlane.xlu1 %992 }
 0x268   : > { %v1011_v43 = vpop.xlane.xlu0 %1010 }
 0x269   : > { %1034 = vst.msk [vmem:[%s2417_s29 + $0x48] sm:$0xff] %vm1024_vm11, %v1011_v43  ;;  %v1009_v61 = vpop.xlane.xlu1 %1008 }
 0x26a   : > { %1033 = vst.msk [vmem:[%s2417_s29 + $0x40] sm:$0xff] %vm1024_vm11, %v1009_v61 }
 0x26c   : > { %v1060_v40 = vpop.xlane.xlu0 %1059 }
 0x26d   : > { %1091 = vst.msk [vmem:[%s2417_s29 + $0x8] sm:$0xff] %vm1089_vm12, %v1060_v40  ;;  %v1058_v10 = vpop.xlane.xlu1 %1057 }
 0x270   : > { %v1076_v60 = vpop.xlane.xlu0 %1075 }
 0x271   : > { %1099 = vst.msk [vmem:[%s2417_s29 + $0x48] sm:$0xff] %vm1089_vm12, %v1076_v60  ;;  %v1074_v33 = vpop.xlane.xlu1 %1073 }
 0x272   : > { %1098 = vst.msk [vmem:[%s2417_s29 + $0x40] sm:$0xff] %vm1089_vm12, %v1074_v33 }
 0x275   : > { %v797_v4 = vpop.xlane.xlu0 %796  ;;  %v817_v46 = vpop.xlane.xlu1 %816 }
 0x276   : > { %829 = vst.msk [vmem:[%s2417_s29] sm:$0xff] %vm828_vm9, %v797_v4  ;;  %839 = vst.msk [vmem:[%s2417_s29 + $0x50] sm:$0xff] %vm828_vm9, %v817_v46 }
 0x277   : > { %927 = vst.msk [vmem:[%s2417_s29] sm:$0xff] %vm926_vm10, %v895_v42 }
 0x278   : > { %1025 = vst.msk [vmem:[%s2417_s29] sm:$0xff] %vm1024_vm11, %v993_v7 }
 0x279   : > { %1090 = vst.msk [vmem:[%s2417_s29] sm:$0xff] %vm1089_vm12, %v1058_v10  ;;  %v803_v34 = vpop.xlane.xlu0 %802  ;;  %v899_v5 = vpop.xlane.xlu1 %898 }
 0x27a   : > { %832 = vst.msk [vmem:[%s2417_s29 + $0x18] sm:$0xff] %vm828_vm9, %v803_v34 }
 0x27d   : > { %v819_v31 = vpop.xlane.xlu0 %818  ;;  %v915_v0 = vpop.xlane.xlu1 %914 }
 0x27e   : > { %840 = vst.msk [vmem:[%s2417_s29 + $0x58] sm:$0xff] %vm828_vm9, %v819_v31 }
 0x27f   : > { %937 = vst.msk [vmem:[%s2417_s29 + $0x50] sm:$0xff] %vm926_vm10, %v915_v0 }
 0x281   : > { %v901_v54 = vpop.xlane.xlu0 %900  ;;  %v997_v13 = vpop.xlane.xlu1 %996 }
 0x282   : > { %930 = vst.msk [vmem:[%s2417_s29 + $0x18] sm:$0xff] %vm926_vm10, %v901_v54 }
 0x285   : > { %v917_v11 = vpop.xlane.xlu0 %916  ;;  %v1013_v6 = vpop.xlane.xlu1 %1012 }
 0x286   : > { %938 = vst.msk [vmem:[%s2417_s29 + $0x58] sm:$0xff] %vm926_vm10, %v917_v11 }
 0x287   : > { %1035 = vst.msk [vmem:[%s2417_s29 + $0x50] sm:$0xff] %vm1024_vm11, %v1013_v6 }
 0x289   : > { %v999_v52 = vpop.xlane.xlu0 %998  ;;  %v1062_v59 = vpop.xlane.xlu1 %1061 }
 0x28a   : > { %1028 = vst.msk [vmem:[%s2417_s29 + $0x18] sm:$0xff] %vm1024_vm11, %v999_v52 }
 0x28d   : > { %v1015_v56 = vpop.xlane.xlu0 %1014  ;;  %v1078_v2 = vpop.xlane.xlu1 %1077 }
 0x28e   : > { %1036 = vst.msk [vmem:[%s2417_s29 + $0x58] sm:$0xff] %vm1024_vm11, %v1015_v56 }
 0x28f   : > { %1100 = vst.msk [vmem:[%s2417_s29 + $0x50] sm:$0xff] %vm1089_vm12, %v1078_v2 }
 0x291   : > { %v1064_v8 = vpop.xlane.xlu0 %1063  ;;  %v805_v49 = vpop.xlane.xlu1 %804 }
 0x292   : > { %1093 = vst.msk [vmem:[%s2417_s29 + $0x18] sm:$0xff] %vm1089_vm12, %v1064_v8 }
 0x293   : > { %833 = vst.msk [vmem:[%s2417_s29 + $0x20] sm:$0xff] %vm828_vm9, %v805_v49 }
 0x295   : > { %v1080_v28 = vpop.xlane.xlu0 %1079  ;;  %v821_v9 = vpop.xlane.xlu1 %820 }
 0x296   : > { %1101 = vst.msk [vmem:[%s2417_s29 + $0x58] sm:$0xff] %vm1089_vm12, %v1080_v28 }
 0x297   : > { %841 = vst.msk [vmem:[%s2417_s29 + $0x60] sm:$0xff] %vm828_vm9, %v821_v9 }
 0x299   : > { %v801_v37 = vpop.xlane.xlu0 %800  ;;  %v903_v23 = vpop.xlane.xlu1 %902 }
 0x29a   : > { %831 = vst.msk [vmem:[%s2417_s29 + $0x10] sm:$0xff] %vm828_vm9, %v801_v37 }
 0x29b   : > { %929 = vst.msk [vmem:[%s2417_s29 + $0x10] sm:$0xff] %vm926_vm10, %v899_v5  ;;  %931 = vst.msk [vmem:[%s2417_s29 + $0x20] sm:$0xff] %vm926_vm10, %v903_v23 }
 0x29c   : > { %1027 = vst.msk [vmem:[%s2417_s29 + $0x10] sm:$0xff] %vm1024_vm11, %v997_v13 }
 0x29d   : > { %1092 = vst.msk [vmem:[%s2417_s29 + $0x10] sm:$0xff] %vm1089_vm12, %v1062_v59  ;;  %v807_v3 = vpop.xlane.xlu0 %806  ;;  %v919_v38 = vpop.xlane.xlu1 %918 }
 0x29e   : > { %834 = vst.msk [vmem:[%s2417_s29 + $0x28] sm:$0xff] %vm828_vm9, %v807_v3 }
 0x29f   : > { %939 = vst.msk [vmem:[%s2417_s29 + $0x60] sm:$0xff] %vm926_vm10, %v919_v38 }
 0x2a1   : > { %v823_v41 = vpop.xlane.xlu0 %822  ;;  %v1001_v14 = vpop.xlane.xlu1 %1000 }
 0x2a2   : > { %842 = vst.msk [vmem:[%s2417_s29 + $0x68] sm:$0xff] %vm828_vm9, %v823_v41 }
 0x2a3   : > { %1029 = vst.msk [vmem:[%s2417_s29 + $0x20] sm:$0xff] %vm1024_vm11, %v1001_v14 }
 0x2a5   : > { %v905_v18 = vpop.xlane.xlu0 %904  ;;  %v1017_v36 = vpop.xlane.xlu1 %1016 }
 0x2a6   : > { %932 = vst.msk [vmem:[%s2417_s29 + $0x28] sm:$0xff] %vm926_vm10, %v905_v18 }
 0x2a7   : > { %1037 = vst.msk [vmem:[%s2417_s29 + $0x60] sm:$0xff] %vm1024_vm11, %v1017_v36 }
 0x2a9   : > { %v921_v39 = vpop.xlane.xlu0 %920  ;;  %v1066_v47 = vpop.xlane.xlu1 %1065 }
 0x2aa   : > { %940 = vst.msk [vmem:[%s2417_s29 + $0x68] sm:$0xff] %vm926_vm10, %v921_v39 }
 0x2ab   : > { %1094 = vst.msk [vmem:[%s2417_s29 + $0x20] sm:$0xff] %vm1089_vm12, %v1066_v47 }
 0x2ad   : > { %v1003_v48 = vpop.xlane.xlu0 %1002  ;;  %v1082_v1 = vpop.xlane.xlu1 %1081 }
 0x2ae   : > { %1030 = vst.msk [vmem:[%s2417_s29 + $0x28] sm:$0xff] %vm1024_vm11, %v1003_v48 }
 0x2af   : > { %1102 = vst.msk [vmem:[%s2417_s29 + $0x60] sm:$0xff] %vm1089_vm12, %v1082_v1 }
 0x2b1   : > { %v1019_v16 = vpop.xlane.xlu0 %1018  ;;  %v809_v12 = vpop.xlane.xlu1 %808 }
 0x2b2   : > { %1038 = vst.msk [vmem:[%s2417_s29 + $0x68] sm:$0xff] %vm1024_vm11, %v1019_v16 }
 0x2b3   : > { %835 = vst.msk [vmem:[%s2417_s29 + $0x30] sm:$0xff] %vm828_vm9, %v809_v12 }
 0x2b5   : > { %v1068_v17 = vpop.xlane.xlu0 %1067  ;;  %v825_v15 = vpop.xlane.xlu1 %824 }
 0x2b6   : > { %1095 = vst.msk [vmem:[%s2417_s29 + $0x28] sm:$0xff] %vm1089_vm12, %v1068_v17 }
 0x2b7   : > { %843 = vst.msk [vmem:[%s2417_s29 + $0x70] sm:$0xff] %vm828_vm9, %v825_v15 }
 0x2b9   : > { %v1084_v58 = vpop.xlane.xlu0 %1083  ;;  %v907_v21 = vpop.xlane.xlu1 %906 }
 0x2ba   : > { %1103 = vst.msk [vmem:[%s2417_s29 + $0x68] sm:$0xff] %vm1089_vm12, %v1084_v58 }
 0x2bb   : > { %933 = vst.msk [vmem:[%s2417_s29 + $0x30] sm:$0xff] %vm926_vm10, %v907_v21 }
 0x2bd   : > { %v811_v22 = vpop.xlane.xlu0 %810  ;;  %v923_v51 = vpop.xlane.xlu1 %922 }
 0x2be   : > { %836 = vst.msk [vmem:[%s2417_s29 + $0x38] sm:$0xff] %vm828_vm9, %v811_v22 }
 0x2bf   : > { %941 = vst.msk [vmem:[%s2417_s29 + $0x70] sm:$0xff] %vm926_vm10, %v923_v51 }
 0x2c1   : > { %v827_v27 = vpop.xlane.xlu0 %826  ;;  %v1005_v53 = vpop.xlane.xlu1 %1004 }
 0x2c2   : > { %844 = vst.msk [vmem:[%s2417_s29 + $0x78] sm:$0xff] %vm828_vm9, %v827_v27 }
 0x2c3   : > { %1031 = vst.msk [vmem:[%s2417_s29 + $0x30] sm:$0xff] %vm1024_vm11, %v1005_v53 }
 0x2c5   : > { %v909_v24 = vpop.xlane.xlu0 %908  ;;  %v1021_v26 = vpop.xlane.xlu1 %1020 }
 0x2c6   : > { %934 = vst.msk [vmem:[%s2417_s29 + $0x38] sm:$0xff] %vm926_vm10, %v909_v24 }
 0x2c7   : > { %1039 = vst.msk [vmem:[%s2417_s29 + $0x70] sm:$0xff] %vm1024_vm11, %v1021_v26 }
 0x2c9   : > { %v925_v32 = vpop.xlane.xlu0 %924  ;;  %v1070_v62 = vpop.xlane.xlu1 %1069 }
 0x2ca   : > { %942 = vst.msk [vmem:[%s2417_s29 + $0x78] sm:$0xff] %vm926_vm10, %v925_v32 }
 0x2cb   : > { %1096 = vst.msk [vmem:[%s2417_s29 + $0x30] sm:$0xff] %vm1089_vm12, %v1070_v62 }
 0x2cd   : > { %v1007_v30 = vpop.xlane.xlu0 %1006  ;;  %v1086_v25 = vpop.xlane.xlu1 %1085 }
 0x2ce   : > { %1032 = vst.msk [vmem:[%s2417_s29 + $0x38] sm:$0xff] %vm1024_vm11, %v1007_v30 }
 0x2cf   : > { %1104 = vst.msk [vmem:[%s2417_s29 + $0x70] sm:$0xff] %vm1089_vm12, %v1086_v25 }
 0x2d1   : > { %v1023_v55 = vpop.xlane.xlu0 %1022 }
 0x2d2   : > { %1040 = vst.msk [vmem:[%s2417_s29 + $0x78] sm:$0xff] %vm1024_vm11, %v1023_v55 }
 0x2d5   : > { %v1072_v45 = vpop.xlane.xlu0 %1071 }
 0x2d6   : > { %1097 = vst.msk [vmem:[%s2417_s29 + $0x38] sm:$0xff] %vm1089_vm12, %v1072_v45 }
 0x2d9   : > { %v1088_v63 = vpop.xlane.xlu0 %1087 }
 0x2da   : > { %1105 = vst.msk [vmem:[%s2417_s29 + $0x78] sm:$0xff] %vm1089_vm12, %v1088_v63 }
 0x2db   : > { %1781 = shalt.err (!%p1778_p9)
}
 0x2dc   : > { %s1782_s11 = scalar_lea.hbm %s2793_s20, 2048  ;;  %s1786_s8 = scalar_lea.hbm %s2844_s3, 4096 }
 0x2dd   : > { %p1783_p10 = scmp.ne.s32.totalorder %s2793_s20, %s1782_s11  ;;  %p1787_p11 = scmp.lt.u32.totalorder %s2793_s20, %s2844_s3 }
 0x2de   : > { %p1788_p4 = scmp.lt.u32.totalorder %s1786_s8, %s1782_s11  ;;  %p1790_p5 = scmp.lt.u32.totalorder %s1782_s11, %s2793_s20 }
 0x2df   : > { %p1784_p0 = pnand %p1783_p10, %p2882_p6 }
 0x2e0   : > { %p1789_p7 = por %p1788_p4, %p1787_p11 }
 0x2e1   : > { %p1785_p3 = pneg %p1784_p0 }
 0x2e2   : > { %p1791_p8 = por %p1790_p5, %p1789_p7 }
 0x2e4   : > { %p1792_p12 = pnand %p1791_p8, %p1785_p3 }
 0x2e6   : > { %1795 = shalt.err (!%p1792_p12)
}
 0x2e7   : > { %s1854_s19 = smov 128   ;;  %s1855_s29 = smov 8  }
 0x2e8   : > { %1596 = dma.vmem_to_hbm [thread:$0]  (%p2882_p6), %s2795_s26, 2048, %s2793_s20, %s1107_s4, %s1854_s19, %s1854_s19, %s1855_s29  }
 0x2e9 PF: > { %s1135_s28 = sand.u32 1, %s1826_s12   ;;  %p2883_p13 = scmp.ne.s32.totalorder %s2856_s25, 0 }
 0x2ea   : > { %p2884_p1 = scmp.ge.s32.totalorder %s1838_s15, 2  ;;  %s1136_s10 = scalar_lea.sflag [#allocation4], %s1135_s28 }
 0x2ec   : > { %p1599_p2 = pnand %p2884_p1, %p2883_p13 }
 0x2ee   : > { %1821 = dma.done.wait (!%p1599_p2), %s1136_s10, 2048  }
 0x2ef   : > { %1823 = vsyncadd (!%p1599_p2), %s1136_s10, 4294965248  ;;  %p19_p9 = scmp.ge.s32.totalorder %s1901_s18, 4   ;;  %s2885_s12 = smov %s1830_s13 }
 0x2f0   : > { %s2886_s13 = smov %s1834_s14  ;;  %s2887_s14 = smov %s1913_s21 }
 0x2f1   : > { %s2888_s15 = smov %s1901_s18  ;;  %21 = sbr.rel (!%p19_p9) target bundleno = 7 (0x7), region = 108 }
 0x2f8   :  { %1141 = vsyncpa [#allocation3], 1 }
 0x2f9   :  { %1143 = vsyncpa [#allocation3 + $0x1], 1 }
 0x2fa   :  { %1144 = vsyncpa [#allocation6], 1 }
 0x2fb   :  { %1146 = vsyncpa [#allocation6 + $0x1], 1 }
 0x2fc   :  { %1147 = vsyncpa [#allocation4], 1 }
 0x2fd   :  { %1149 = vsyncpa [#allocation4 + $0x1], 1 }

</bundles_post_ra>
